<compile_context>
chip_gen: v6e
topology: v6e:2x2x1
jax: 0.10.0
libtpu: 0.0.40
codegen_flags: <defaults>
</compile_context>

<pallas_src>
import jax
import jax.numpy as jnp
from jax import lax
from jax.experimental import pallas as pl
from jax.experimental.pallas import tpu as pltpu


def _round_up(x, m):
    return ((x + m - 1) // m) * m


def _decoder_kernel(x_ref, h0_ref, c0_ref, wih_ref, whh_ref, b_ref,
                    wout_ref, bout_ref,
                    logp_ref, hn_ref, cn_ref,
                    xg_scr):
    """All refs are whole (padded) arrays resident in VMEM.

    x_ref   : (T*Bp, Ip)     time-major, batch-padded, flattened over (T, Bp)
    h0/c0   : (Bp, Hp)
    wih_ref : (Ip, 4*Hp)     gate blocks lane-aligned at multiples of Hp
    whh_ref : (Hp, 4*Hp)
    b_ref   : (1, 4*Hp)      b_ih + b_hh, gate-blocked/padded
    wout_ref: (Hp, Op)
    bout_ref: (1, Op)        padded entries are -1e30
    logp_ref: (Bp, Op)   hn_ref/cn_ref: (Bp, Hp)
    xg_scr  : (T*Bp, 4*Hp)   precomputed input-gate projections
    """
    Bp, Hp = h0_ref.shape
    T = x_ref.shape[0] // Bp

    # Hoist the input projection (all time steps) off the serial critical path:
    # one big MXU matmul + bias, written to VMEM scratch.
    xg_scr[...] = (jnp.dot(x_ref[...], wih_ref[...],
                           preferred_element_type=jnp.float32)
                   + b_ref[...])

    def step(t, carry):
        h, c = carry
        row = pl.multiple_of(t * Bp, Bp)          # sublane-tile aligned offset
        # Only the small recurrent matmul sits on the critical path.
        gates = (xg_scr[pl.ds(row, Bp), :]
                 + jnp.dot(h, whh_ref[...],
                           preferred_element_type=jnp.float32))      # (Bp, 4*Hp)
        # Gate slices are lane-tile aligned (Hp is a multiple of 128).
        i_g = jax.nn.sigmoid(gates[:, 0 * Hp:1 * Hp])
        f_g = jax.nn.sigmoid(gates[:, 1 * Hp:2 * Hp])
        g_g = jnp.tanh(gates[:, 2 * Hp:3 * Hp])
        o_g = jax.nn.sigmoid(gates[:, 3 * Hp:4 * Hp])
        c_new = f_g * c + i_g * g_g
        h_new = o_g * jnp.tanh(c_new)
        return (h_new, c_new)

    h, c = lax.fori_loop(0, T, step, (h0_ref[...], c0_ref[...]), unroll=True)

    hn_ref[...] = h
    cn_ref[...] = c

    # logits = hn[0] @ W_out^T + b_out ; log_softmax over the out dimension.
    logits = (jnp.dot(h, wout_ref[...], preferred_element_type=jnp.float32)
              + bout_ref[...])                                       # (Bp, Op)
    m = jnp.max(logits, axis=1, keepdims=True)
    z = logits - m
    lse = jnp.log(jnp.sum(jnp.exp(z), axis=1, keepdims=True))
    logp_ref[...] = z - lse


@jax.jit
def rnn_decoder_forward(emb, h0, c0, w_ih, w_hh, b_ih, b_hh, w_out, b_out):
    """emb: (B, T, I) f32; h0/c0: (1, B, H); returns (logp (B, O), (hn, cn))."""
    B, T, I = emb.shape
    H = h0.shape[-1]
    O = w_out.shape[0]
    f32 = jnp.float32

    # Padded sizes: lane-dense (128) for I, H and O, sublane (8) for B.
    Bp = _round_up(B, 8)
    Hp = _round_up(H, 128)
    Op = _round_up(O, 128)
    Ip = _round_up(I, 128)

    # --- time-major, batch- & lane-padded, flattened input -------------------
    x_tm = jnp.transpose(emb.astype(f32), (1, 0, 2))                 # (T, B, I)
    x_pad = jnp.zeros((T, Bp, Ip), f32).at[:, :B, :I].set(x_tm)
    x_flat = x_pad.reshape(T * Bp, Ip)                               # (T*Bp, Ip)

    # --- gate-blocked, lane-padded LSTM weights (PyTorch gate order i,f,g,o) --
    wih_t = jnp.transpose(w_ih).astype(f32).reshape(I, 4, H)         # (I, 4, H)
    wih_pad = (jnp.zeros((Ip, 4, Hp), f32).at[:I, :, :H].set(wih_t)
               .reshape(Ip, 4 * Hp))

    whh_t = jnp.transpose(w_hh).astype(f32).reshape(H, 4, H)         # (H, 4, H)
    whh_pad = (jnp.zeros((Hp, 4, Hp), f32).at[:H, :, :H].set(whh_t)
               .reshape(Hp, 4 * Hp))

    bias = (b_ih + b_hh).astype(f32).reshape(4, H)
    bias_pad = (jnp.zeros((4, Hp), f32).at[:, :H].set(bias)
                .reshape(1, 4 * Hp))

    # --- output projection, O padded to a full lane tile ---------------------
    wout_t = jnp.transpose(w_out).astype(f32)                        # (H, O)
    wout_pad = jnp.zeros((Hp, Op), f32).at[:H, :O].set(wout_t)
    bout_pad = jnp.full((1, Op), -1e30, f32).at[0, :O].set(b_out.astype(f32))

    # --- initial state --------------------------------------------------------
    h0_pad = jnp.zeros((Bp, Hp), f32).at[:B, :H].set(h0[0].astype(f32))
    c0_pad = jnp.zeros((Bp, Hp), f32).at[:B, :H].set(c0[0].astype(f32))

    vmem = pl.BlockSpec(memory_space=pltpu.MemorySpace.VMEM)

    logp_pad, hn_pad, cn_pad = pl.pallas_call(
        _decoder_kernel,
        out_shape=(
            jax.ShapeDtypeStruct((Bp, Op), f32),
            jax.ShapeDtypeStruct((Bp, Hp), f32),
            jax.ShapeDtypeStruct((Bp, Hp), f32),
        ),
        in_specs=[vmem] * 8,
        out_specs=(vmem, vmem, vmem),
        scratch_shapes=[pltpu.VMEM((T * Bp, 4 * Hp), f32)],
    )(x_flat, h0_pad, c0_pad, wih_pad, whh_pad, bias_pad, wout_pad, bout_pad)

    logp = logp_pad[:B, :O]
    hn = hn_pad[:B, :H][None]
    cn = cn_pad[:B, :H][None]
    return logp, (hn, cn)


def _reference_forward(emb, h0, c0, w_ih, w_hh, b_ih, b_hh, w_out, b_out):
    """Pure-JAX reference mirroring torch.nn.LSTM + Linear + LogSoftmax."""
    B, T, I = emb.shape
    H = h0.shape[-1]
    h, c = h0[0], c0[0]
    for t in range(T):
        x = emb[:, t, :]
        gates = x @ w_ih.T + h @ w_hh.T + b_ih + b_hh
        i_g = jax.nn.sigmoid(gates[:, 0 * H:1 * H])
        f_g = jax.nn.sigmoid(gates[:, 1 * H:2 * H])
        g_g = jnp.tanh(gates[:, 2 * H:3 * H])
        o_g = jax.nn.sigmoid(gates[:, 3 * H:4 * H])
        c = f_g * c + i_g * g_g
        h = o_g * jnp.tanh(c)
    logits = h @ w_out.T + b_out
    logp = jax.nn.log_softmax(logits, axis=1)
    return logp, (h[None], c[None])


if __name__ == "__main__":
    # Small shapes consistent with the module: batch=2, seq=8, input=16,
    # hidden=32, out=10.
    B, T, I, H, O = 2, 8, 16, 32, 10

    key = jax.random.PRNGKey(0)
    ks = jax.random.split(key, 10)
    scale = 1.0 / jnp.sqrt(H)

    emb = jax.random.normal(ks[0], (B, T, I), dtype=jnp.float32)
    h0 = jax.random.normal(ks[1], (1, B, H), dtype=jnp.float32)
    c0 = jax.random.normal(ks[2], (1, B, H), dtype=jnp.float32)

    # LSTM params (PyTorch shapes): weight_ih_l0 (4H, I), weight_hh_l0 (4H, H)
    w_ih = jax.random.uniform(ks[3], (4 * H, I), minval=-scale, maxval=scale)
    w_hh = jax.random.uniform(ks[4], (4 * H, H), minval=-scale, maxval=scale)
    b_ih = jax.random.uniform(ks[5], (4 * H,), minval=-scale, maxval=scale)
    b_hh = jax.random.uniform(ks[6], (4 * H,), minval=-scale, maxval=scale)
    # Linear W: (out_size, hidden)
    w_out = jax.random.uniform(ks[7], (O, H), minval=-scale, maxval=scale)
    b_out = jax.random.uniform(ks[8], (O,), minval=-scale, maxval=scale)

    logp, (hn, cn) = rnn_decoder_forward(emb, h0, c0, w_ih, w_hh, b_ih, b_hh,
                                         w_out, b_out)
    jax.block_until_ready((logp, hn, cn))

    # sanity-check against pure-JAX reference
    ref_logp, (ref_hn, ref_cn) = _reference_forward(
        emb, h0, c0, w_ih, w_hh, b_ih, b_hh, w_out, b_out)
    assert jnp.allclose(logp, ref_logp, atol=1e-5), "logp mismatch"
    assert jnp.allclose(hn, ref_hn, atol=1e-5), "hn mismatch"
    assert jnp.allclose(cn, ref_cn, atol=1e-5), "cn mismatch"

    print("KERNEL_OK")
</pallas_src>

<mosaic_0001>
module attributes {stable_mosaic.version = 11 : i64} {
  func.func @_decoder_kernel(%arg0: memref<64x128xf32, #tpu.memory_space<vmem>>, %arg1: memref<8x128xf32, #tpu.memory_space<vmem>>, %arg2: memref<8x128xf32, #tpu.memory_space<vmem>>, %arg3: memref<128x512xf32, #tpu.memory_space<vmem>>, %arg4: memref<128x512xf32, #tpu.memory_space<vmem>>, %arg5: memref<1x512xf32, #tpu.memory_space<vmem>>, %arg6: memref<128x128xf32, #tpu.memory_space<vmem>>, %arg7: memref<1x128xf32, #tpu.memory_space<vmem>>, %arg8: memref<8x128xf32, #tpu.memory_space<vmem>>, %arg9: memref<8x128xf32, #tpu.memory_space<vmem>>, %arg10: memref<8x128xf32, #tpu.memory_space<vmem>>, %arg11: memref<64x512xf32, #tpu.memory_space<vmem>>) attributes {dimension_semantics = [], scalar_prefetch = 0 : i64, scratch_operands = 1 : i64, tpu.core_type = #tpu.core_type<tc>} {
    %c0 = arith.constant 0 : index
    %c0_0 = arith.constant 0 : index
    %0 = vector.load %arg0[%c0, %c0_0] : memref<64x128xf32, #tpu.memory_space<vmem>>, vector<64x128xf32>
    %c0_1 = arith.constant 0 : index
    %c0_2 = arith.constant 0 : index
    %1 = vector.load %arg3[%c0_1, %c0_2] : memref<128x512xf32, #tpu.memory_space<vmem>>, vector<128x512xf32>
    %cst = arith.constant dense<0.000000e+00> : vector<64x512xf32>
    %2 = tpu.matmul %0, %1, %cst {dimension_numbers = #tpu.dot_dimension_numbers<[1], [0], [0], [1], [0, 0, 1, 1], [], []>} : vector<64x128xf32>, vector<128x512xf32>, vector<64x512xf32> -> vector<64x512xf32>
    %c0_3 = arith.constant 0 : index
    %c0_4 = arith.constant 0 : index
    %3 = vector.load %arg5[%c0_3, %c0_4] : memref<1x512xf32, #tpu.memory_space<vmem>>, vector<1x512xf32>
    %4 = vector.broadcast %3 : vector<1x512xf32> to vector<64x512xf32>
    %5 = arith.addf %2, %4 : vector<64x512xf32>
    %c0_5 = arith.constant 0 : index
    %c0_6 = arith.constant 0 : index
    %6 = vector.load %arg11[%c0_5, %c0_6] : memref<64x512xf32, #tpu.memory_space<vmem>>, vector<64x512xf32>
    tpu.vector_store %arg11[%c0_5, %c0_6], %5 {strides = array<i32>} : memref<64x512xf32, #tpu.memory_space<vmem>>, vector<64x512xf32>,
    %c0_7 = arith.constant 0 : index
    %c0_8 = arith.constant 0 : index
    %7 = vector.load %arg1[%c0_7, %c0_8] : memref<8x128xf32, #tpu.memory_space<vmem>>, vector<8x128xf32>
    %c0_9 = arith.constant 0 : index
    %c0_10 = arith.constant 0 : index
    %8 = vector.load %arg2[%c0_9, %c0_10] : memref<8x128xf32, #tpu.memory_space<vmem>>, vector<8x128xf32>
    %c0_i32 = arith.constant 0 : i32
    %c8_i32 = arith.constant 8 : i32
    %9 = arith.muli %c0_i32, %c8_i32 : i32
    %10 = tpu.assume_multiple %9, 8 : i32
    %11 = arith.index_cast %10 : i32 to index
    %c0_11 = arith.constant 0 : index
    %12 = vector.load %arg11[%11, %c0_11] : memref<64x512xf32, #tpu.memory_space<vmem>>, vector<8x512xf32>
    %c0_12 = arith.constant 0 : index
    %c0_13 = arith.constant 0 : index
    %13 = vector.load %arg4[%c0_12, %c0_13] : memref<128x512xf32, #tpu.memory_space<vmem>>, vector<128x512xf32>
    %cst_14 = arith.constant dense<0.000000e+00> : vector<8x512xf32>
    %14 = tpu.matmul %7, %13, %cst_14 {dimension_numbers = #tpu.dot_dimension_numbers<[1], [0], [0], [1], [0, 0, 1, 1], [], []>} : vector<8x128xf32>, vector<128x512xf32>, vector<8x512xf32> -> vector<8x512xf32>
    %15 = arith.addf %12, %14 : vector<8x512xf32>
    %16 = vector.extract_strided_slice %15 {offsets = [0, 0], sizes = [8, 128], strides = [1, 1]} : vector<8x512xf32> to vector<8x128xf32>
    %17 = arith.negf %16 : vector<8x128xf32>
    %18 = math.exp %17 : vector<8x128xf32>
    %cst_15 = arith.constant 1.000000e+00 : f32
    %19 = vector.broadcast %cst_15 : f32 to vector<8x128xf32>
    %20 = arith.addf %19, %18 : vector<8x128xf32>
    %21 = arith.divf %19, %20 : vector<8x128xf32>
    %22 = vector.extract_strided_slice %15 {offsets = [0, 128], sizes = [8, 128], strides = [1, 1]} : vector<8x512xf32> to vector<8x128xf32>
    %23 = arith.negf %22 : vector<8x128xf32>
    %24 = math.exp %23 : vector<8x128xf32>
    %cst_16 = arith.constant 1.000000e+00 : f32
    %25 = vector.broadcast %cst_16 : f32 to vector<8x128xf32>
    %26 = arith.addf %25, %24 : vector<8x128xf32>
    %27 = arith.divf %25, %26 : vector<8x128xf32>
    %28 = vector.extract_strided_slice %15 {offsets = [0, 256], sizes = [8, 128], strides = [1, 1]} : vector<8x512xf32> to vector<8x128xf32>
    %29 = math.tanh %28 : vector<8x128xf32>
    %30 = vector.extract_strided_slice %15 {offsets = [0, 384], sizes = [8, 128], strides = [1, 1]} : vector<8x512xf32> to vector<8x128xf32>
    %31 = arith.negf %30 : vector<8x128xf32>
    %32 = math.exp %31 : vector<8x128xf32>
    %cst_17 = arith.constant 1.000000e+00 : f32
    %33 = vector.broadcast %cst_17 : f32 to vector<8x128xf32>
    %34 = arith.addf %33, %32 : vector<8x128xf32>
    %35 = arith.divf %33, %34 : vector<8x128xf32>
    %36 = arith.mulf %27, %8 : vector<8x128xf32>
    %37 = arith.mulf %21, %29 : vector<8x128xf32>
    %38 = arith.addf %36, %37 : vector<8x128xf32>
    %39 = math.tanh %38 : vector<8x128xf32>
    %40 = arith.mulf %35, %39 : vector<8x128xf32>
    %c1_i32 = arith.constant 1 : i32
    %c8_i32_18 = arith.constant 8 : i32
    %41 = arith.muli %c1_i32, %c8_i32_18 : i32
    %42 = tpu.assume_multiple %41, 8 : i32
    %43 = arith.index_cast %42 : i32 to index
    %c0_19 = arith.constant 0 : index
    %44 = vector.load %arg11[%43, %c0_19] : memref<64x512xf32, #tpu.memory_space<vmem>>, vector<8x512xf32>
    %c0_20 = arith.constant 0 : index
    %c0_21 = arith.constant 0 : index
    %45 = vector.load %arg4[%c0_20, %c0_21] : memref<128x512xf32, #tpu.memory_space<vmem>>, vector<128x512xf32>
    %cst_22 = arith.constant dense<0.000000e+00> : vector<8x512xf32>
    %46 = tpu.matmul %40, %45, %cst_22 {dimension_numbers = #tpu.dot_dimension_numbers<[1], [0], [0], [1], [0, 0, 1, 1], [], []>} : vector<8x128xf32>, vector<128x512xf32>, vector<8x512xf32> -> vector<8x512xf32>
    %47 = arith.addf %44, %46 : vector<8x512xf32>
    %48 = vector.extract_strided_slice %47 {offsets = [0, 0], sizes = [8, 128], strides = [1, 1]} : vector<8x512xf32> to vector<8x128xf32>
    %49 = arith.negf %48 : vector<8x128xf32>
    %50 = math.exp %49 : vector<8x128xf32>
    %cst_23 = arith.constant 1.000000e+00 : f32
    %51 = vector.broadcast %cst_23 : f32 to vector<8x128xf32>
    %52 = arith.addf %51, %50 : vector<8x128xf32>
    %53 = arith.divf %51, %52 : vector<8x128xf32>
    %54 = vector.extract_strided_slice %47 {offsets = [0, 128], sizes = [8, 128], strides = [1, 1]} : vector<8x512xf32> to vector<8x128xf32>
    %55 = arith.negf %54 : vector<8x128xf32>
    %56 = math.exp %55 : vector<8x128xf32>
    %cst_24 = arith.constant 1.000000e+00 : f32
    %57 = vector.broadcast %cst_24 : f32 to vector<8x128xf32>
    %58 = arith.addf %57, %56 : vector<8x128xf32>
    %59 = arith.divf %57, %58 : vector<8x128xf32>
    %60 = vector.extract_strided_slice %47 {offsets = [0, 256], sizes = [8, 128], strides = [1, 1]} : vector<8x512xf32> to vector<8x128xf32>
    %61 = math.tanh %60 : vector<8x128xf32>
    %62 = vector.extract_strided_slice %47 {offsets = [0, 384], sizes = [8, 128], strides = [1, 1]} : vector<8x512xf32> to vector<8x128xf32>
    %63 = arith.negf %62 : vector<8x128xf32>
    %64 = math.exp %63 : vector<8x128xf32>
    %cst_25 = arith.constant 1.000000e+00 : f32
    %65 = vector.broadcast %cst_25 : f32 to vector<8x128xf32>
    %66 = arith.addf %65, %64 : vector<8x128xf32>
    %67 = arith.divf %65, %66 : vector<8x128xf32>
    %68 = arith.mulf %59, %38 : vector<8x128xf32>
    %69 = arith.mulf %53, %61 : vector<8x128xf32>
    %70 = arith.addf %68, %69 : vector<8x128xf32>
    %71 = math.tanh %70 : vector<8x128xf32>
    %72 = arith.mulf %67, %71 : vector<8x128xf32>
    %c2_i32 = arith.constant 2 : i32
    %c8_i32_26 = arith.constant 8 : i32
    %73 = arith.muli %c2_i32, %c8_i32_26 : i32
    %74 = tpu.assume_multiple %73, 8 : i32
    %75 = arith.index_cast %74 : i32 to index
    %c0_27 = arith.constant 0 : index
    %76 = vector.load %arg11[%75, %c0_27] : memref<64x512xf32, #tpu.memory_space<vmem>>, vector<8x512xf32>
    %c0_28 = arith.constant 0 : index
    %c0_29 = arith.constant 0 : index
    %77 = vector.load %arg4[%c0_28, %c0_29] : memref<128x512xf32, #tpu.memory_space<vmem>>, vector<128x512xf32>
    %cst_30 = arith.constant dense<0.000000e+00> : vector<8x512xf32>
    %78 = tpu.matmul %72, %77, %cst_30 {dimension_numbers = #tpu.dot_dimension_numbers<[1], [0], [0], [1], [0, 0, 1, 1], [], []>} : vector<8x128xf32>, vector<128x512xf32>, vector<8x512xf32> -> vector<8x512xf32>
    %79 = arith.addf %76, %78 : vector<8x512xf32>
    %80 = vector.extract_strided_slice %79 {offsets = [0, 0], sizes = [8, 128], strides = [1, 1]} : vector<8x512xf32> to vector<8x128xf32>
    %81 = arith.negf %80 : vector<8x128xf32>
    %82 = math.exp %81 : vector<8x128xf32>
    %cst_31 = arith.constant 1.000000e+00 : f32
    %83 = vector.broadcast %cst_31 : f32 to vector<8x128xf32>
    %84 = arith.addf %83, %82 : vector<8x128xf32>
    %85 = arith.divf %83, %84 : vector<8x128xf32>
    %86 = vector.extract_strided_slice %79 {offsets = [0, 128], sizes = [8, 128], strides = [1, 1]} : vector<8x512xf32> to vector<8x128xf32>
    %87 = arith.negf %86 : vector<8x128xf32>
    %88 = math.exp %87 : vector<8x128xf32>
    %cst_32 = arith.constant 1.000000e+00 : f32
    %89 = vector.broadcast %cst_32 : f32 to vector<8x128xf32>
    %90 = arith.addf %89, %88 : vector<8x128xf32>
    %91 = arith.divf %89, %90 : vector<8x128xf32>
    %92 = vector.extract_strided_slice %79 {offsets = [0, 256], sizes = [8, 128], strides = [1, 1]} : vector<8x512xf32> to vector<8x128xf32>
    %93 = math.tanh %92 : vector<8x128xf32>
    %94 = vector.extract_strided_slice %79 {offsets = [0, 384], sizes = [8, 128], strides = [1, 1]} : vector<8x512xf32> to vector<8x128xf32>
    %95 = arith.negf %94 : vector<8x128xf32>
    %96 = math.exp %95 : vector<8x128xf32>
    %cst_33 = arith.constant 1.000000e+00 : f32
    %97 = vector.broadcast %cst_33 : f32 to vector<8x128xf32>
    %98 = arith.addf %97, %96 : vector<8x128xf32>
    %99 = arith.divf %97, %98 : vector<8x128xf32>
    %100 = arith.mulf %91, %70 : vector<8x128xf32>
    %101 = arith.mulf %85, %93 : vector<8x128xf32>
    %102 = arith.addf %100, %101 : vector<8x128xf32>
    %103 = math.tanh %102 : vector<8x128xf32>
    %104 = arith.mulf %99, %103 : vector<8x128xf32>
    %c3_i32 = arith.constant 3 : i32
    %c8_i32_34 = arith.constant 8 : i32
    %105 = arith.muli %c3_i32, %c8_i32_34 : i32
    %106 = tpu.assume_multiple %105, 8 : i32
    %107 = arith.index_cast %106 : i32 to index
    %c0_35 = arith.constant 0 : index
    %108 = vector.load %arg11[%107, %c0_35] : memref<64x512xf32, #tpu.memory_space<vmem>>, vector<8x512xf32>
    %c0_36 = arith.constant 0 : index
    %c0_37 = arith.constant 0 : index
    %109 = vector.load %arg4[%c0_36, %c0_37] : memref<128x512xf32, #tpu.memory_space<vmem>>, vector<128x512xf32>
    %cst_38 = arith.constant dense<0.000000e+00> : vector<8x512xf32>
    %110 = tpu.matmul %104, %109, %cst_38 {dimension_numbers = #tpu.dot_dimension_numbers<[1], [0], [0], [1], [0, 0, 1, 1], [], []>} : vector<8x128xf32>, vector<128x512xf32>, vector<8x512xf32> -> vector<8x512xf32>
    %111 = arith.addf %108, %110 : vector<8x512xf32>
    %112 = vector.extract_strided_slice %111 {offsets = [0, 0], sizes = [8, 128], strides = [1, 1]} : vector<8x512xf32> to vector<8x128xf32>
    %113 = arith.negf %112 : vector<8x128xf32>
    %114 = math.exp %113 : vector<8x128xf32>
    %cst_39 = arith.constant 1.000000e+00 : f32
    %115 = vector.broadcast %cst_39 : f32 to vector<8x128xf32>
    %116 = arith.addf %115, %114 : vector<8x128xf32>
    %117 = arith.divf %115, %116 : vector<8x128xf32>
    %118 = vector.extract_strided_slice %111 {offsets = [0, 128], sizes = [8, 128], strides = [1, 1]} : vector<8x512xf32> to vector<8x128xf32>
    %119 = arith.negf %118 : vector<8x128xf32>
    %120 = math.exp %119 : vector<8x128xf32>
    %cst_40 = arith.constant 1.000000e+00 : f32
    %121 = vector.broadcast %cst_40 : f32 to vector<8x128xf32>
    %122 = arith.addf %121, %120 : vector<8x128xf32>
    %123 = arith.divf %121, %122 : vector<8x128xf32>
    %124 = vector.extract_strided_slice %111 {offsets = [0, 256], sizes = [8, 128], strides = [1, 1]} : vector<8x512xf32> to vector<8x128xf32>
    %125 = math.tanh %124 : vector<8x128xf32>
    %126 = vector.extract_strided_slice %111 {offsets = [0, 384], sizes = [8, 128], strides = [1, 1]} : vector<8x512xf32> to vector<8x128xf32>
    %127 = arith.negf %126 : vector<8x128xf32>
    %128 = math.exp %127 : vector<8x128xf32>
    %cst_41 = arith.constant 1.000000e+00 : f32
    %129 = vector.broadcast %cst_41 : f32 to vector<8x128xf32>
    %130 = arith.addf %129, %128 : vector<8x128xf32>
    %131 = arith.divf %129, %130 : vector<8x128xf32>
    %132 = arith.mulf %123, %102 : vector<8x128xf32>
    %133 = arith.mulf %117, %125 : vector<8x128xf32>
    %134 = arith.addf %132, %133 : vector<8x128xf32>
    %135 = math.tanh %134 : vector<8x128xf32>
    %136 = arith.mulf %131, %135 : vector<8x128xf32>
    %c4_i32 = arith.constant 4 : i32
    %c8_i32_42 = arith.constant 8 : i32
    %137 = arith.muli %c4_i32, %c8_i32_42 : i32
    %138 = tpu.assume_multiple %137, 8 : i32
    %139 = arith.index_cast %138 : i32 to index
    %c0_43 = arith.constant 0 : index
    %140 = vector.load %arg11[%139, %c0_43] : memref<64x512xf32, #tpu.memory_space<vmem>>, vector<8x512xf32>
    %c0_44 = arith.constant 0 : index
    %c0_45 = arith.constant 0 : index
    %141 = vector.load %arg4[%c0_44, %c0_45] : memref<128x512xf32, #tpu.memory_space<vmem>>, vector<128x512xf32>
    %cst_46 = arith.constant dense<0.000000e+00> : vector<8x512xf32>
    %142 = tpu.matmul %136, %141, %cst_46 {dimension_numbers = #tpu.dot_dimension_numbers<[1], [0], [0], [1], [0, 0, 1, 1], [], []>} : vector<8x128xf32>, vector<128x512xf32>, vector<8x512xf32> -> vector<8x512xf32>
    %143 = arith.addf %140, %142 : vector<8x512xf32>
    %144 = vector.extract_strided_slice %143 {offsets = [0, 0], sizes = [8, 128], strides = [1, 1]} : vector<8x512xf32> to vector<8x128xf32>
    %145 = arith.negf %144 : vector<8x128xf32>
    %146 = math.exp %145 : vector<8x128xf32>
    %cst_47 = arith.constant 1.000000e+00 : f32
    %147 = vector.broadcast %cst_47 : f32 to vector<8x128xf32>
    %148 = arith.addf %147, %146 : vector<8x128xf32>
    %149 = arith.divf %147, %148 : vector<8x128xf32>
    %150 = vector.extract_strided_slice %143 {offsets = [0, 128], sizes = [8, 128], strides = [1, 1]} : vector<8x512xf32> to vector<8x128xf32>
    %151 = arith.negf %150 : vector<8x128xf32>
    %152 = math.exp %151 : vector<8x128xf32>
    %cst_48 = arith.constant 1.000000e+00 : f32
    %153 = vector.broadcast %cst_48 : f32 to vector<8x128xf32>
    %154 = arith.addf %153, %152 : vector<8x128xf32>
    %155 = arith.divf %153, %154 : vector<8x128xf32>
    %156 = vector.extract_strided_slice %143 {offsets = [0, 256], sizes = [8, 128], strides = [1, 1]} : vector<8x512xf32> to vector<8x128xf32>
    %157 = math.tanh %156 : vector<8x128xf32>
    %158 = vector.extract_strided_slice %143 {offsets = [0, 384], sizes = [8, 128], strides = [1, 1]} : vector<8x512xf32> to vector<8x128xf32>
    %159 = arith.negf %158 : vector<8x128xf32>
    %160 = math.exp %159 : vector<8x128xf32>
    %cst_49 = arith.constant 1.000000e+00 : f32
    %161 = vector.broadcast %cst_49 : f32 to vector<8x128xf32>
    %162 = arith.addf %161, %160 : vector<8x128xf32>
    %163 = arith.divf %161, %162 : vector<8x128xf32>
    %164 = arith.mulf %155, %134 : vector<8x128xf32>
    %165 = arith.mulf %149, %157 : vector<8x128xf32>
    %166 = arith.addf %164, %165 : vector<8x128xf32>
    %167 = math.tanh %166 : vector<8x128xf32>
    %168 = arith.mulf %163, %167 : vector<8x128xf32>
    %c5_i32 = arith.constant 5 : i32
    %c8_i32_50 = arith.constant 8 : i32
    %169 = arith.muli %c5_i32, %c8_i32_50 : i32
    %170 = tpu.assume_multiple %169, 8 : i32
    %171 = arith.index_cast %170 : i32 to index
    %c0_51 = arith.constant 0 : index
    %172 = vector.load %arg11[%171, %c0_51] : memref<64x512xf32, #tpu.memory_space<vmem>>, vector<8x512xf32>
    %c0_52 = arith.constant 0 : index
    %c0_53 = arith.constant 0 : index
    %173 = vector.load %arg4[%c0_52, %c0_53] : memref<128x512xf32, #tpu.memory_space<vmem>>, vector<128x512xf32>
    %cst_54 = arith.constant dense<0.000000e+00> : vector<8x512xf32>
    %174 = tpu.matmul %168, %173, %cst_54 {dimension_numbers = #tpu.dot_dimension_numbers<[1], [0], [0], [1], [0, 0, 1, 1], [], []>} : vector<8x128xf32>, vector<128x512xf32>, vector<8x512xf32> -> vector<8x512xf32>
    %175 = arith.addf %172, %174 : vector<8x512xf32>
    %176 = vector.extract_strided_slice %175 {offsets = [0, 0], sizes = [8, 128], strides = [1, 1]} : vector<8x512xf32> to vector<8x128xf32>
    %177 = arith.negf %176 : vector<8x128xf32>
    %178 = math.exp %177 : vector<8x128xf32>
    %cst_55 = arith.constant 1.000000e+00 : f32
    %179 = vector.broadcast %cst_55 : f32 to vector<8x128xf32>
    %180 = arith.addf %179, %178 : vector<8x128xf32>
    %181 = arith.divf %179, %180 : vector<8x128xf32>
    %182 = vector.extract_strided_slice %175 {offsets = [0, 128], sizes = [8, 128], strides = [1, 1]} : vector<8x512xf32> to vector<8x128xf32>
    %183 = arith.negf %182 : vector<8x128xf32>
    %184 = math.exp %183 : vector<8x128xf32>
    %cst_56 = arith.constant 1.000000e+00 : f32
    %185 = vector.broadcast %cst_56 : f32 to vector<8x128xf32>
    %186 = arith.addf %185, %184 : vector<8x128xf32>
    %187 = arith.divf %185, %186 : vector<8x128xf32>
    %188 = vector.extract_strided_slice %175 {offsets = [0, 256], sizes = [8, 128], strides = [1, 1]} : vector<8x512xf32> to vector<8x128xf32>
    %189 = math.tanh %188 : vector<8x128xf32>
    %190 = vector.extract_strided_slice %175 {offsets = [0, 384], sizes = [8, 128], strides = [1, 1]} : vector<8x512xf32> to vector<8x128xf32>
    %191 = arith.negf %190 : vector<8x128xf32>
    %192 = math.exp %191 : vector<8x128xf32>
    %cst_57 = arith.constant 1.000000e+00 : f32
    %193 = vector.broadcast %cst_57 : f32 to vector<8x128xf32>
    %194 = arith.addf %193, %192 : vector<8x128xf32>
    %195 = arith.divf %193, %194 : vector<8x128xf32>
    %196 = arith.mulf %187, %166 : vector<8x128xf32>
    %197 = arith.mulf %181, %189 : vector<8x128xf32>
    %198 = arith.addf %196, %197 : vector<8x128xf32>
    %199 = math.tanh %198 : vector<8x128xf32>
    %200 = arith.mulf %195, %199 : vector<8x128xf32>
    %c6_i32 = arith.constant 6 : i32
    %c8_i32_58 = arith.constant 8 : i32
    %201 = arith.muli %c6_i32, %c8_i32_58 : i32
    %202 = tpu.assume_multiple %201, 8 : i32
    %203 = arith.index_cast %202 : i32 to index
    %c0_59 = arith.constant 0 : index
    %204 = vector.load %arg11[%203, %c0_59] : memref<64x512xf32, #tpu.memory_space<vmem>>, vector<8x512xf32>
    %c0_60 = arith.constant 0 : index
    %c0_61 = arith.constant 0 : index
    %205 = vector.load %arg4[%c0_60, %c0_61] : memref<128x512xf32, #tpu.memory_space<vmem>>, vector<128x512xf32>
    %cst_62 = arith.constant dense<0.000000e+00> : vector<8x512xf32>
    %206 = tpu.matmul %200, %205, %cst_62 {dimension_numbers = #tpu.dot_dimension_numbers<[1], [0], [0], [1], [0, 0, 1, 1], [], []>} : vector<8x128xf32>, vector<128x512xf32>, vector<8x512xf32> -> vector<8x512xf32>
    %207 = arith.addf %204, %206 : vector<8x512xf32>
    %208 = vector.extract_strided_slice %207 {offsets = [0, 0], sizes = [8, 128], strides = [1, 1]} : vector<8x512xf32> to vector<8x128xf32>
    %209 = arith.negf %208 : vector<8x128xf32>
    %210 = math.exp %209 : vector<8x128xf32>
    %cst_63 = arith.constant 1.000000e+00 : f32
    %211 = vector.broadcast %cst_63 : f32 to vector<8x128xf32>
    %212 = arith.addf %211, %210 : vector<8x128xf32>
    %213 = arith.divf %211, %212 : vector<8x128xf32>
    %214 = vector.extract_strided_slice %207 {offsets = [0, 128], sizes = [8, 128], strides = [1, 1]} : vector<8x512xf32> to vector<8x128xf32>
    %215 = arith.negf %214 : vector<8x128xf32>
    %216 = math.exp %215 : vector<8x128xf32>
    %cst_64 = arith.constant 1.000000e+00 : f32
    %217 = vector.broadcast %cst_64 : f32 to vector<8x128xf32>
    %218 = arith.addf %217, %216 : vector<8x128xf32>
    %219 = arith.divf %217, %218 : vector<8x128xf32>
    %220 = vector.extract_strided_slice %207 {offsets = [0, 256], sizes = [8, 128], strides = [1, 1]} : vector<8x512xf32> to vector<8x128xf32>
    %221 = math.tanh %220 : vector<8x128xf32>
    %222 = vector.extract_strided_slice %207 {offsets = [0, 384], sizes = [8, 128], strides = [1, 1]} : vector<8x512xf32> to vector<8x128xf32>
    %223 = arith.negf %222 : vector<8x128xf32>
    %224 = math.exp %223 : vector<8x128xf32>
    %cst_65 = arith.constant 1.000000e+00 : f32
    %225 = vector.broadcast %cst_65 : f32 to vector<8x128xf32>
    %226 = arith.addf %225, %224 : vector<8x128xf32>
    %227 = arith.divf %225, %226 : vector<8x128xf32>
    %228 = arith.mulf %219, %198 : vector<8x128xf32>
    %229 = arith.mulf %213, %221 : vector<8x128xf32>
    %230 = arith.addf %228, %229 : vector<8x128xf32>
    %231 = math.tanh %230 : vector<8x128xf32>
    %232 = arith.mulf %227, %231 : vector<8x128xf32>
    %c7_i32 = arith.constant 7 : i32
    %c8_i32_66 = arith.constant 8 : i32
    %233 = arith.muli %c7_i32, %c8_i32_66 : i32
    %234 = tpu.assume_multiple %233, 8 : i32
    %235 = arith.index_cast %234 : i32 to index
    %c0_67 = arith.constant 0 : index
    %236 = vector.load %arg11[%235, %c0_67] : memref<64x512xf32, #tpu.memory_space<vmem>>, vector<8x512xf32>
    %c0_68 = arith.constant 0 : index
    %c0_69 = arith.constant 0 : index
    %237 = vector.load %arg4[%c0_68, %c0_69] : memref<128x512xf32, #tpu.memory_space<vmem>>, vector<128x512xf32>
    %cst_70 = arith.constant dense<0.000000e+00> : vector<8x512xf32>
    %238 = tpu.matmul %232, %237, %cst_70 {dimension_numbers = #tpu.dot_dimension_numbers<[1], [0], [0], [1], [0, 0, 1, 1], [], []>} : vector<8x128xf32>, vector<128x512xf32>, vector<8x512xf32> -> vector<8x512xf32>
    %239 = arith.addf %236, %238 : vector<8x512xf32>
    %240 = vector.extract_strided_slice %239 {offsets = [0, 0], sizes = [8, 128], strides = [1, 1]} : vector<8x512xf32> to vector<8x128xf32>
    %241 = arith.negf %240 : vector<8x128xf32>
    %242 = math.exp %241 : vector<8x128xf32>
    %cst_71 = arith.constant 1.000000e+00 : f32
    %243 = vector.broadcast %cst_71 : f32 to vector<8x128xf32>
    %244 = arith.addf %243, %242 : vector<8x128xf32>
    %245 = arith.divf %243, %244 : vector<8x128xf32>
    %246 = vector.extract_strided_slice %239 {offsets = [0, 128], sizes = [8, 128], strides = [1, 1]} : vector<8x512xf32> to vector<8x128xf32>
    %247 = arith.negf %246 : vector<8x128xf32>
    %248 = math.exp %247 : vector<8x128xf32>
    %cst_72 = arith.constant 1.000000e+00 : f32
    %249 = vector.broadcast %cst_72 : f32 to vector<8x128xf32>
    %250 = arith.addf %249, %248 : vector<8x128xf32>
    %251 = arith.divf %249, %250 : vector<8x128xf32>
    %252 = vector.extract_strided_slice %239 {offsets = [0, 256], sizes = [8, 128], strides = [1, 1]} : vector<8x512xf32> to vector<8x128xf32>
    %253 = math.tanh %252 : vector<8x128xf32>
    %254 = vector.extract_strided_slice %239 {offsets = [0, 384], sizes = [8, 128], strides = [1, 1]} : vector<8x512xf32> to vector<8x128xf32>
    %255 = arith.negf %254 : vector<8x128xf32>
    %256 = math.exp %255 : vector<8x128xf32>
    %cst_73 = arith.constant 1.000000e+00 : f32
    %257 = vector.broadcast %cst_73 : f32 to vector<8x128xf32>
    %258 = arith.addf %257, %256 : vector<8x128xf32>
    %259 = arith.divf %257, %258 : vector<8x128xf32>
    %260 = arith.mulf %251, %230 : vector<8x128xf32>
    %261 = arith.mulf %245, %253 : vector<8x128xf32>
    %262 = arith.addf %260, %261 : vector<8x128xf32>
    %263 = math.tanh %262 : vector<8x128xf32>
    %264 = arith.mulf %259, %263 : vector<8x128xf32>
    %c8_i32_74 = arith.constant 8 : i32
    %c0_75 = arith.constant 0 : index
    %c0_76 = arith.constant 0 : index
    %265 = vector.load %arg9[%c0_75, %c0_76] : memref<8x128xf32, #tpu.memory_space<vmem>>, vector<8x128xf32>
    tpu.vector_store %arg9[%c0_75, %c0_76], %264 {strides = array<i32>} : memref<8x128xf32, #tpu.memory_space<vmem>>, vector<8x128xf32>,
    %c0_77 = arith.constant 0 : index
    %c0_78 = arith.constant 0 : index
    %266 = vector.load %arg10[%c0_77, %c0_78] : memref<8x128xf32, #tpu.memory_space<vmem>>, vector<8x128xf32>
    tpu.vector_store %arg10[%c0_77, %c0_78], %262 {strides = array<i32>} : memref<8x128xf32, #tpu.memory_space<vmem>>, vector<8x128xf32>,
    %c0_79 = arith.constant 0 : index
    %c0_80 = arith.constant 0 : index
    %267 = vector.load %arg6[%c0_79, %c0_80] : memref<128x128xf32, #tpu.memory_space<vmem>>, vector<128x128xf32>
    %cst_81 = arith.constant dense<0.000000e+00> : vector<8x128xf32>
    %268 = tpu.matmul %264, %267, %cst_81 {dimension_numbers = #tpu.dot_dimension_numbers<[1], [0], [0], [1], [0, 0, 1, 1], [], []>} : vector<8x128xf32>, vector<128x128xf32>, vector<8x128xf32> -> vector<8x128xf32>
    %c0_82 = arith.constant 0 : index
    %c0_83 = arith.constant 0 : index
    %269 = vector.load %arg7[%c0_82, %c0_83] : memref<1x128xf32, #tpu.memory_space<vmem>>, vector<1x128xf32>
    %270 = vector.broadcast %269 : vector<1x128xf32> to vector<8x128xf32>
    %271 = arith.addf %268, %270 : vector<8x128xf32>
    %cst_84 = arith.constant dense<0xFF800000> : vector<8xf32>
    %272 = vector.multi_reduction <maximumf>, %271, %cst_84 [1] : vector<8x128xf32> to vector<8xf32>
    %273 = vector.shape_cast %272 : vector<8xf32> to vector<8x1xf32>
    %274 = vector.broadcast %273 : vector<8x1xf32> to vector<8x128xf32>
    %275 = arith.subf %271, %274 : vector<8x128xf32>
    %276 = math.exp %275 : vector<8x128xf32>
    %cst_85 = arith.constant dense<0.000000e+00> : vector<8xf32>
    %277 = vector.multi_reduction <add>, %276, %cst_85 [1] : vector<8x128xf32> to vector<8xf32>
    %278 = vector.shape_cast %277 : vector<8xf32> to vector<8x1xf32>
    %279 = math.log %278 : vector<8x1xf32>
    %280 = vector.broadcast %279 : vector<8x1xf32> to vector<8x128xf32>
    %281 = arith.subf %275, %280 : vector<8x128xf32>
    %c0_86 = arith.constant 0 : index
    %c0_87 = arith.constant 0 : index
    %282 = vector.load %arg8[%c0_86, %c0_87] : memref<8x128xf32, #tpu.memory_space<vmem>>, vector<8x128xf32>
    tpu.vector_store %arg8[%c0_86, %c0_87], %281 {strides = array<i32>} : memref<8x128xf32, #tpu.memory_space<vmem>>, vector<8x128xf32>,
    return
  }
}

</mosaic_0001>

<bundles_post_ra>
// kernel: rnn_decoder_forward.1
= control target key start
LH: loop header
LB: loop body
LE: loop exit
PB: predicated region body
PF: predicated region fallthrough
CT: control target
= control target key end

     0   :  { %v3964_v3 = vmov 0.0   ;;  %vm2267_vm0 = vmmov 0   ;;  %s3953_s3 = inlined_call_operand.vmem [shape: f32[128,512], index: 3, kind: input, shape index: {}]   ;;  %s3954_s0 = inlined_call_operand.vmem [shape: f32[64,128], index: 0, kind: input, shape index: {}]   ;;  %s3955_s4 = inlined_call_operand.vmem [shape: f32[128,512], index: 4, kind: input, shape index: {}]   ;;  %s3956_s1 = inlined_call_operand.vmem [shape: f32[8,128], index: 1, kind: input, shape index: {}]   ;;  %s3957_s5 = inlined_call_operand.vmem [shape: f32[1,512], index: 5, kind: input, shape index: {}]   ;;  %s3958_s2 = inlined_call_operand.vmem [shape: f32[8,128], index: 2, kind: input, shape index: {}]   ;;  %s3959_s6 = inlined_call_operand.vmem [shape: f32[128,128], index: 6, kind: input, shape index: {}]   ;;  %s3960_s10 = inlined_call_operand.vmem [shape: f32[8,128], index: 10, kind: output, shape index: {2}]   ;;  %s3961_s9 = inlined_call_operand.vmem [shape: f32[8,128], index: 9, kind: output, shape index: {1}]   ;;  %s3962_s7 = inlined_call_operand.vmem [shape: f32[1,128], index: 7, kind: input, shape index: {}]   ;;  %s3963_s8 = inlined_call_operand.vmem [shape: f32[8,128], index: 8, kind: output, shape index: {0}]  }
   0x1   :  { %v101_v0 = vld [vmem:[%s3953_s3 + $0x1e8] sm:$0xff]  ;;  %v103_v1 = vld [vmem:[%s3953_s3 + $0x1f8] sm:$0xff]  ;;  %v100_v2 = vld [vmem:[%s3953_s3 + $0x1e0] sm:$0xff]  ;;  %190 = vmatprep.mubr.f32.mxu0 %v3964_v3  ;;  %303 = vmatprep.mubr.f32.mxu1 %v3964_v3 }
   0x2   :  { %126 = vmatprep.subr.mxu0 %v101_v0  ;;  %239 = vmatprep.subr.mxu1 %v103_v1  ;;  %v102_v4 = vld [vmem:[%s3953_s3 + $0x1f0] sm:$0xff]  ;;  %v97_v5 = vld [vmem:[%s3953_s3 + $0x1c8] sm:$0xff]  ;;  %v99_v6 = vld [vmem:[%s3953_s3 + $0x1d8] sm:$0xff] }
   0x3   :  { %127 = vmatpush1.msra.mxu0 %v100_v2  ;;  %240 = vmatpush1.msra.mxu1 %v102_v4  ;;  %v96_v7 = vld [vmem:[%s3953_s3 + $0x1c0] sm:$0xff]  ;;  %v98_v8 = vld [vmem:[%s3953_s3 + $0x1d0] sm:$0xff]  ;;  %v93_v9 = vld [vmem:[%s3953_s3 + $0x1a8] sm:$0xff] }
   0x4   :  { %128 = vmatprep.subr.mxu0 %v97_v5  ;;  %241 = vmatprep.subr.mxu1 %v99_v6  ;;  %v95_v10 = vld [vmem:[%s3953_s3 + $0x1b8] sm:$0xff]  ;;  %v92_v11 = vld [vmem:[%s3953_s3 + $0x1a0] sm:$0xff]  ;;  %v94_v12 = vld [vmem:[%s3953_s3 + $0x1b0] sm:$0xff] }
   0x5   :  { %129 = vmatpush1.msra.mxu0 %v96_v7  ;;  %242 = vmatpush1.msra.mxu1 %v98_v8  ;;  %v89_v13 = vld [vmem:[%s3953_s3 + $0x188] sm:$0xff]  ;;  %v91_v14 = vld [vmem:[%s3953_s3 + $0x198] sm:$0xff]  ;;  %v88_v15 = vld [vmem:[%s3953_s3 + $0x180] sm:$0xff] }
   0x6   :  { %130 = vmatprep.subr.mxu0 %v93_v9  ;;  %243 = vmatprep.subr.mxu1 %v95_v10  ;;  %v90_v16 = vld [vmem:[%s3953_s3 + $0x190] sm:$0xff]  ;;  %v85_v17 = vld [vmem:[%s3953_s3 + $0x168] sm:$0xff]  ;;  %v87_v18 = vld [vmem:[%s3953_s3 + $0x178] sm:$0xff] }
   0x7   :  { %131 = vmatpush1.msra.mxu0 %v92_v11  ;;  %244 = vmatpush1.msra.mxu1 %v94_v12  ;;  %v84_v19 = vld [vmem:[%s3953_s3 + $0x160] sm:$0xff]  ;;  %v86_v20 = vld [vmem:[%s3953_s3 + $0x170] sm:$0xff]  ;;  %v81_v21 = vld [vmem:[%s3953_s3 + $0x148] sm:$0xff] }
   0x8   :  { %132 = vmatprep.subr.mxu0 %v89_v13  ;;  %245 = vmatprep.subr.mxu1 %v91_v14  ;;  %v83_v22 = vld [vmem:[%s3953_s3 + $0x158] sm:$0xff]  ;;  %v80_v23 = vld [vmem:[%s3953_s3 + $0x140] sm:$0xff]  ;;  %v82_v24 = vld [vmem:[%s3953_s3 + $0x150] sm:$0xff] }
   0x9   :  { %133 = vmatpush1.msra.mxu0 %v88_v15  ;;  %246 = vmatpush1.msra.mxu1 %v90_v16  ;;  %v77_v25 = vld [vmem:[%s3953_s3 + $0x128] sm:$0xff]  ;;  %v79_v26 = vld [vmem:[%s3953_s3 + $0x138] sm:$0xff]  ;;  %v76_v27 = vld [vmem:[%s3953_s3 + $0x120] sm:$0xff] }
   0xa   :  { %134 = vmatprep.subr.mxu0 %v85_v17  ;;  %247 = vmatprep.subr.mxu1 %v87_v18  ;;  %v78_v28 = vld [vmem:[%s3953_s3 + $0x130] sm:$0xff]  ;;  %v73_v29 = vld [vmem:[%s3953_s3 + $0x108] sm:$0xff]  ;;  %v75_v30 = vld [vmem:[%s3953_s3 + $0x118] sm:$0xff] }
   0xb   :  { %135 = vmatpush1.msra.mxu0 %v84_v19  ;;  %248 = vmatpush1.msra.mxu1 %v86_v20  ;;  %v72_v31 = vld [vmem:[%s3953_s3 + $0x100] sm:$0xff]  ;;  %v74_v32 = vld [vmem:[%s3953_s3 + $0x110] sm:$0xff]  ;;  %v69_v33 = vld [vmem:[%s3953_s3 + $0xe8] sm:$0xff] }
   0xc   :  { %136 = vmatprep.subr.mxu0 %v81_v21  ;;  %249 = vmatprep.subr.mxu1 %v83_v22  ;;  %v71_v34 = vld [vmem:[%s3953_s3 + $0xf8] sm:$0xff]  ;;  %v68_v35 = vld [vmem:[%s3953_s3 + $0xe0] sm:$0xff]  ;;  %v70_v36 = vld [vmem:[%s3953_s3 + $0xf0] sm:$0xff] }
   0xd   :  { %137 = vmatpush1.msra.mxu0 %v80_v23  ;;  %250 = vmatpush1.msra.mxu1 %v82_v24  ;;  %v65_v37 = vld [vmem:[%s3953_s3 + $0xc8] sm:$0xff]  ;;  %v67_v38 = vld [vmem:[%s3953_s3 + $0xd8] sm:$0xff]  ;;  %v64_v39 = vld [vmem:[%s3953_s3 + $0xc0] sm:$0xff] }
   0xe   :  { %138 = vmatprep.subr.mxu0 %v77_v25  ;;  %251 = vmatprep.subr.mxu1 %v79_v26  ;;  %v66_v40 = vld [vmem:[%s3953_s3 + $0xd0] sm:$0xff]  ;;  %v61_v41 = vld [vmem:[%s3953_s3 + $0xa8] sm:$0xff]  ;;  %v63_v42 = vld [vmem:[%s3953_s3 + $0xb8] sm:$0xff] }
   0xf   :  { %139 = vmatpush1.msra.mxu0 %v76_v27  ;;  %252 = vmatpush1.msra.mxu1 %v78_v28  ;;  %v60_v43 = vld [vmem:[%s3953_s3 + $0xa0] sm:$0xff]  ;;  %v62_v44 = vld [vmem:[%s3953_s3 + $0xb0] sm:$0xff]  ;;  %v57_v45 = vld [vmem:[%s3953_s3 + $0x88] sm:$0xff] }
  0x10   :  { %140 = vmatprep.subr.mxu0 %v73_v29  ;;  %253 = vmatprep.subr.mxu1 %v75_v30  ;;  %v59_v46 = vld [vmem:[%s3953_s3 + $0x98] sm:$0xff]  ;;  %v56_v47 = vld [vmem:[%s3953_s3 + $0x80] sm:$0xff]  ;;  %v58_v48 = vld [vmem:[%s3953_s3 + $0x90] sm:$0xff] }
  0x11   :  { %141 = vmatpush1.msra.mxu0 %v72_v31  ;;  %254 = vmatpush1.msra.mxu1 %v74_v32  ;;  %v53_v49 = vld [vmem:[%s3953_s3 + $0x68] sm:$0xff]  ;;  %v55_v50 = vld [vmem:[%s3953_s3 + $0x78] sm:$0xff]  ;;  %v52_v51 = vld [vmem:[%s3953_s3 + $0x60] sm:$0xff] }
  0x12   :  { %142 = vmatprep.subr.mxu0 %v69_v33  ;;  %255 = vmatprep.subr.mxu1 %v71_v34  ;;  %v54_v52 = vld [vmem:[%s3953_s3 + $0x70] sm:$0xff]  ;;  %v49_v53 = vld [vmem:[%s3953_s3 + $0x48] sm:$0xff]  ;;  %v51_v54 = vld [vmem:[%s3953_s3 + $0x58] sm:$0xff] }
  0x13   :  { %143 = vmatpush1.msra.mxu0 %v68_v35  ;;  %256 = vmatpush1.msra.mxu1 %v70_v36  ;;  %v48_v55 = vld [vmem:[%s3953_s3 + $0x40] sm:$0xff]  ;;  %v50_v56 = vld [vmem:[%s3953_s3 + $0x50] sm:$0xff]  ;;  %v45_v57 = vld [vmem:[%s3953_s3 + $0x28] sm:$0xff] }
  0x14   :  { %144 = vmatprep.subr.mxu0 %v65_v37  ;;  %257 = vmatprep.subr.mxu1 %v67_v38  ;;  %v47_v58 = vld [vmem:[%s3953_s3 + $0x38] sm:$0xff]  ;;  %v44_v59 = vld [vmem:[%s3953_s3 + $0x20] sm:$0xff]  ;;  %v46_v60 = vld [vmem:[%s3953_s3 + $0x30] sm:$0xff] }
  0x15   :  { %145 = vmatpush1.msra.mxu0 %v64_v39  ;;  %258 = vmatpush1.msra.mxu1 %v66_v40  ;;  %v41_v61 = vld [vmem:[%s3953_s3 + $0x8] sm:$0xff]  ;;  %v43_v62 = vld [vmem:[%s3953_s3 + $0x18] sm:$0xff]  ;;  %v40_v63 = vld [vmem:[%s3953_s3] sm:$0xff] }
  0x16   :  { %146 = vmatprep.subr.mxu0 %v61_v41  ;;  %259 = vmatprep.subr.mxu1 %v63_v42  ;;  %v42_v0 = vld [vmem:[%s3953_s3 + $0x10] sm:$0xff]  ;;  %v32_v1 = vld [vmem:[%s3954_s0] sm:$0xff]  ;;  %v2523_v2 = vld [vmem:[%s3955_s4 + $0x1e8] sm:$0xff] }
  0x17   :  { %147 = vmatpush1.msra.mxu0 %v60_v43  ;;  %260 = vmatpush1.msra.mxu1 %v62_v44  ;;  %4052 = vst [vmem:[#allocation3_spill] sm:$0xff] %v2523_v2  ;;  %v2528_v4 = vld [vmem:[%s3955_s4 + $0x1f8] sm:$0xff]  ;;  %v2533_v5 = vld [vmem:[%s3955_s4 + $0x1e0] sm:$0xff]  ;;  %v2538_v6 = vld [vmem:[%s3955_s4 + $0x1f0] sm:$0xff] }
  0x18   :  { %148 = vmatprep.subr.mxu0 %v57_v45  ;;  %261 = vmatprep.subr.mxu1 %v59_v46  ;;  %4053 = vst [vmem:[#allocation4_spill] sm:$0xff] %v2528_v4  ;;  %v2543_v7 = vld [vmem:[%s3955_s4 + $0x1c8] sm:$0xff]  ;;  %v2548_v8 = vld [vmem:[%s3955_s4 + $0x1d8] sm:$0xff]  ;;  %v2557_v9 = vld [vmem:[%s3955_s4 + $0x1c0] sm:$0xff] }
  0x19   :  { %149 = vmatpush1.msra.mxu0 %v56_v47  ;;  %262 = vmatpush1.msra.mxu1 %v58_v48  ;;  %v2562_v10 = vld [vmem:[%s3955_s4 + $0x1d0] sm:$0xff]  ;;  %v33_v11 = vld [vmem:[%s3954_s0 + $0x8] sm:$0xff]  ;;  %v2579_v13 = vld [vmem:[%s3955_s4 + $0x1b8] sm:$0xff] }
  0x1a   :  { %150 = vmatprep.subr.mxu0 %v53_v49  ;;  %263 = vmatprep.subr.mxu1 %v55_v50  ;;  %v2574_v12 = vld [vmem:[%s3955_s4 + $0x1a8] sm:$0xff]  ;;  %v2586_v14 = vld [vmem:[%s3955_s4 + $0x1a0] sm:$0xff]  ;;  %v2591_v15 = vld [vmem:[%s3955_s4 + $0x1b0] sm:$0xff] }
  0x1b   :  { %151 = vmatpush1.msra.mxu0 %v52_v51  ;;  %264 = vmatpush1.msra.mxu1 %v54_v52  ;;  %v2596_v16 = vld [vmem:[%s3955_s4 + $0x188] sm:$0xff]  ;;  %v2601_v17 = vld [vmem:[%s3955_s4 + $0x198] sm:$0xff]  ;;  %v2610_v18 = vld [vmem:[%s3955_s4 + $0x180] sm:$0xff] }
  0x1c   :  { %152 = vmatprep.subr.mxu0 %v49_v53  ;;  %265 = vmatprep.subr.mxu1 %v51_v54  ;;  %v2615_v19 = vld [vmem:[%s3955_s4 + $0x190] sm:$0xff]  ;;  %v2627_v21 = vld [vmem:[%s3955_s4 + $0x168] sm:$0xff]  ;;  %v2632_v22 = vld [vmem:[%s3955_s4 + $0x178] sm:$0xff] }
  0x1d   :  { %153 = vmatpush1.msra.mxu0 %v48_v55  ;;  %266 = vmatpush1.msra.mxu1 %v50_v56  ;;  %v34_v20 = vld [vmem:[%s3954_s0 + $0x10] sm:$0xff]  ;;  %v2639_v23 = vld [vmem:[%s3955_s4 + $0x160] sm:$0xff]  ;;  %v2649_v25 = vld [vmem:[%s3955_s4 + $0x148] sm:$0xff] }
  0x1e   :  { %154 = vmatprep.subr.mxu0 %v45_v57  ;;  %267 = vmatprep.subr.mxu1 %v47_v58  ;;  %v2644_v24 = vld [vmem:[%s3955_s4 + $0x170] sm:$0xff]  ;;  %v2654_v26 = vld [vmem:[%s3955_s4 + $0x158] sm:$0xff]  ;;  %v2663_v27 = vld [vmem:[%s3955_s4 + $0x140] sm:$0xff] }
  0x1f   :  { %155 = vmatpush1.msra.mxu0 %v44_v59  ;;  %268 = vmatpush1.msra.mxu1 %v46_v60  ;;  %v2668_v28 = vld [vmem:[%s3955_s4 + $0x150] sm:$0xff]  ;;  %v35_v29 = vld [vmem:[%s3954_s0 + $0x18] sm:$0xff]  ;;  %v2680_v30 = vld [vmem:[%s3955_s4 + $0x128] sm:$0xff] }
  0x20   :  { %156 = vmatprep.subr.mxu0 %v41_v61  ;;  %269 = vmatprep.subr.mxu1 %v43_v62  ;;  %v2685_v31 = vld [vmem:[%s3955_s4 + $0x138] sm:$0xff]  ;;  %v2692_v32 = vld [vmem:[%s3955_s4 + $0x120] sm:$0xff]  ;;  %v2697_v33 = vld [vmem:[%s3955_s4 + $0x130] sm:$0xff] }
  0x21   :  { %157 = vmatpush1.msra.mxu0 %v40_v63  ;;  %270 = vmatpush1.msra.mxu1 %v42_v0  ;;  %v2702_v34 = vld [vmem:[%s3955_s4 + $0x108] sm:$0xff]  ;;  %v2707_v35 = vld [vmem:[%s3955_s4 + $0x118] sm:$0xff]  ;;  %v2716_v36 = vld [vmem:[%s3955_s4 + $0x100] sm:$0xff] }
  0x22   :  { %191 = vmatmul.mubr.f32.vlgmr.msra.gmra.mxu0 %v32_v1  ;;  %304 = vmatmul.mubr.f32.vlgmr.msra.gmra.mxu1 %v32_v1  ;;  %v2721_v37 = vld [vmem:[%s3955_s4 + $0x110] sm:$0xff]  ;;  %v36_v38 = vld [vmem:[%s3954_s0 + $0x20] sm:$0xff]  ;;  %v2733_v39 = vld [vmem:[%s3955_s4 + $0xe8] sm:$0xff] }
  0x23   :  { %457 = vmatprep.subr.mxu0 %v2523_v2  ;;  %528 = vmatprep.subr.mxu1 %v2528_v4  ;;  %v2738_v40 = vld [vmem:[%s3955_s4 + $0xf8] sm:$0xff]  ;;  %v2745_v41 = vld [vmem:[%s3955_s4 + $0xe0] sm:$0xff]  ;;  %v2750_v42 = vld [vmem:[%s3955_s4 + $0xf0] sm:$0xff] }
  0x24   :  { %458 = vmatpush1.msra.mxu0 %v2533_v5  ;;  %529 = vmatpush1.msra.mxu1 %v2538_v6  ;;  %v2755_v43 = vld [vmem:[%s3955_s4 + $0xc8] sm:$0xff]  ;;  %v2760_v44 = vld [vmem:[%s3955_s4 + $0xd8] sm:$0xff]  ;;  %v2769_v45 = vld [vmem:[%s3955_s4 + $0xc0] sm:$0xff] }
  0x25   :  { %459 = vmatprep.subr.mxu0 %v2543_v7  ;;  %530 = vmatprep.subr.mxu1 %v2548_v8  ;;  %v2774_v46 = vld [vmem:[%s3955_s4 + $0xd0] sm:$0xff]  ;;  %v37_v47 = vld [vmem:[%s3954_s0 + $0x28] sm:$0xff]  ;;  %v2791_v49 = vld [vmem:[%s3955_s4 + $0xb8] sm:$0xff] }
  0x26   :  { %196 = vmatprep.mubr.f32.mxu0 %v3964_v3  ;;  %309 = vmatprep.mubr.f32.mxu1 %v3964_v3  ;;  %v2786_v48 = vld [vmem:[%s3955_s4 + $0xa8] sm:$0xff]  ;;  %v2798_v50 = vld [vmem:[%s3955_s4 + $0xa0] sm:$0xff]  ;;  %v2803_v51 = vld [vmem:[%s3955_s4 + $0xb0] sm:$0xff] }
  0x27   :  { %460 = vmatpush1.msra.mxu0 %v2557_v9  ;;  %531 = vmatpush1.msra.mxu1 %v2562_v10  ;;  %v2808_v52 = vld [vmem:[%s3955_s4 + $0x88] sm:$0xff]  ;;  %v2813_v53 = vld [vmem:[%s3955_s4 + $0x98] sm:$0xff]  ;;  %v2822_v54 = vld [vmem:[%s3955_s4 + $0x80] sm:$0xff] }
  0x28   :  { %197 = vmatmul.mubr.f32.gmra.mxu0 %v33_v11  ;;  %310 = vmatmul.mubr.f32.gmra.mxu1 %v33_v11  ;;  %4054 = vst [vmem:[#allocation5_spill] sm:$0xff] %v2808_v52  ;;  %4055 = vst [vmem:[#allocation6_spill] sm:$0xff] %v2813_v53  ;;  %v2827_v55 = vld [vmem:[%s3955_s4 + $0x90] sm:$0xff]  ;;  %v2839_v57 = vld [vmem:[%s3955_s4 + $0x68] sm:$0xff] }
  0x29   :  { %461 = vmatprep.subr.mxu0 %v2574_v12  ;;  %532 = vmatprep.subr.mxu1 %v2579_v13  ;;  %4056 = vst [vmem:[#allocation7_spill] sm:$0xff] %v2822_v54  ;;  %4057 = vst [vmem:[#allocation8_spill] sm:$0xff] %v2827_v55  ;;  %v38_v56 = vld [vmem:[%s3954_s0 + $0x30] sm:$0xff]  ;;  %v2844_v58 = vld [vmem:[%s3955_s4 + $0x78] sm:$0xff] }
  0x2a   :  { %462 = vmatpush1.msra.mxu0 %v2586_v14  ;;  %533 = vmatpush1.msra.mxu1 %v2591_v15  ;;  %4058 = vst [vmem:[#allocation9_spill] sm:$0xff] %v2839_v57  ;;  %4059 = vst [vmem:[#allocation10_spill] sm:$0xff] %v2844_v58  ;;  %v2851_v59 = vld [vmem:[%s3955_s4 + $0x60] sm:$0xff]  ;;  %v2856_v60 = vld [vmem:[%s3955_s4 + $0x70] sm:$0xff] }
  0x2b   :  { %463 = vmatprep.subr.mxu0 %v2596_v16  ;;  %534 = vmatprep.subr.mxu1 %v2601_v17  ;;  %4060 = vst [vmem:[#allocation11_spill] sm:$0xff] %v2851_v59  ;;  %4061 = vst [vmem:[#allocation12_spill] sm:$0xff] %v2856_v60  ;;  %v2861_v61 = vld [vmem:[%s3955_s4 + $0x48] sm:$0xff]  ;;  %v2866_v62 = vld [vmem:[%s3955_s4 + $0x58] sm:$0xff] }
  0x2c   :  { %202 = vmatprep.mubr.f32.mxu0 %v3964_v3  ;;  %315 = vmatprep.mubr.f32.mxu1 %v3964_v3  ;;  %4062 = vst [vmem:[#allocation13_spill] sm:$0xff] %v2861_v61  ;;  %4063 = vst [vmem:[#allocation14_spill] sm:$0xff] %v2866_v62  ;;  %v2875_v63 = vld [vmem:[%s3955_s4 + $0x40] sm:$0xff]  ;;  %v2880_v0 = vld [vmem:[%s3955_s4 + $0x50] sm:$0xff] }
  0x2d   :  { %464 = vmatpush1.msra.mxu0 %v2610_v18  ;;  %535 = vmatpush1.msra.mxu1 %v2615_v19  ;;  %4064 = vst [vmem:[#allocation15_spill] sm:$0xff] %v2875_v63  ;;  %4065 = vst [vmem:[#allocation16_spill] sm:$0xff] %v2880_v0  ;;  %v39_v1 = vld [vmem:[%s3954_s0 + $0x38] sm:$0xff]  ;;  %v2892_v11 = vld [vmem:[%s3955_s4 + $0x28] sm:$0xff] }
  0x2e   :  { %203 = vmatmul.mubr.f32.gmra.mxu0 %v34_v20  ;;  %316 = vmatmul.mubr.f32.gmra.mxu1 %v34_v20  ;;  %4066 = vst [vmem:[#allocation17_spill] sm:$0xff] %v2892_v11  ;;  %v2897_v20 = vld [vmem:[%s3955_s4 + $0x38] sm:$0xff] }
  0x2f   :  { %465 = vmatprep.subr.mxu0 %v2627_v21  ;;  %536 = vmatprep.subr.mxu1 %v2632_v22  ;;  %4067 = vst [vmem:[#allocation18_spill] sm:$0xff] %v2897_v20 }
  0x30   :  { %466 = vmatpush1.msra.mxu0 %v2639_v23  ;;  %537 = vmatpush1.msra.mxu1 %v2644_v24 }
  0x31   :  { %467 = vmatprep.subr.mxu0 %v2649_v25  ;;  %538 = vmatprep.subr.mxu1 %v2654_v26 }
  0x32   :  { %208 = vmatprep.mubr.f32.mxu0 %v3964_v3  ;;  %321 = vmatprep.mubr.f32.mxu1 %v3964_v3 }
  0x33   :  { %468 = vmatpush1.msra.mxu0 %v2663_v27  ;;  %539 = vmatpush1.msra.mxu1 %v2668_v28 }
  0x34   :  { %209 = vmatmul.mubr.f32.gmra.mxu0 %v35_v29  ;;  %322 = vmatmul.mubr.f32.gmra.mxu1 %v35_v29  ;;  %v2904_v29 = vld [vmem:[%s3955_s4 + $0x20] sm:$0xff] }
  0x35   :  { %469 = vmatprep.subr.mxu0 %v2680_v30  ;;  %540 = vmatprep.subr.mxu1 %v2685_v31  ;;  %4068 = vst [vmem:[#allocation19_spill] sm:$0xff] %v2904_v29 }
  0x36   :  { %470 = vmatpush1.msra.mxu0 %v2692_v32  ;;  %541 = vmatpush1.msra.mxu1 %v2697_v33 }
  0x37   :  { %471 = vmatprep.subr.mxu0 %v2702_v34  ;;  %542 = vmatprep.subr.mxu1 %v2707_v35 }
  0x38   :  { %214 = vmatprep.mubr.f32.mxu0 %v3964_v3  ;;  %327 = vmatprep.mubr.f32.mxu1 %v3964_v3 }
  0x39   :  { %472 = vmatpush1.msra.mxu0 %v2716_v36  ;;  %543 = vmatpush1.msra.mxu1 %v2721_v37 }
  0x3a   :  { %215 = vmatmul.mubr.f32.gmra.mxu0 %v36_v38  ;;  %328 = vmatmul.mubr.f32.gmra.mxu1 %v36_v38  ;;  %v2909_v38 = vld [vmem:[%s3955_s4 + $0x30] sm:$0xff] }
  0x3b   :  { %473 = vmatprep.subr.mxu0 %v2733_v39  ;;  %544 = vmatprep.subr.mxu1 %v2738_v40  ;;  %4069 = vst [vmem:[#allocation20_spill] sm:$0xff] %v2909_v38 }
  0x3c   :  { %474 = vmatpush1.msra.mxu0 %v2745_v41  ;;  %545 = vmatpush1.msra.mxu1 %v2750_v42 }
  0x3d   :  { %475 = vmatprep.subr.mxu0 %v2755_v43  ;;  %546 = vmatprep.subr.mxu1 %v2760_v44 }
  0x3e   :  { %220 = vmatprep.mubr.f32.mxu0 %v3964_v3  ;;  %333 = vmatprep.mubr.f32.mxu1 %v3964_v3 }
  0x3f   :  { %476 = vmatpush1.msra.mxu0 %v2769_v45  ;;  %547 = vmatpush1.msra.mxu1 %v2774_v46 }
  0x40   :  { %221 = vmatmul.mubr.f32.gmra.mxu0 %v37_v47  ;;  %334 = vmatmul.mubr.f32.gmra.mxu1 %v37_v47  ;;  %v2914_v47 = vld [vmem:[%s3955_s4 + $0x8] sm:$0xff] }
  0x41   :  { %477 = vmatprep.subr.mxu0 %v2786_v48  ;;  %548 = vmatprep.subr.mxu1 %v2791_v49  ;;  %4070 = vst [vmem:[#allocation21_spill] sm:$0xff] %v2914_v47 }
  0x42   :  { %478 = vmatpush1.msra.mxu0 %v2798_v50  ;;  %549 = vmatpush1.msra.mxu1 %v2803_v51 }
  0x43   :  { %479 = vmatprep.subr.mxu0 %v2808_v52  ;;  %550 = vmatprep.subr.mxu1 %v2813_v53 }
  0x44   :  { %226 = vmatprep.mubr.f32.mxu0 %v3964_v3  ;;  %339 = vmatprep.mubr.f32.mxu1 %v3964_v3 }
  0x45   :  { %480 = vmatpush1.msra.mxu0 %v2822_v54  ;;  %551 = vmatpush1.msra.mxu1 %v2827_v55 }
  0x46   :  { %227 = vmatmul.mubr.f32.gmra.mxu0 %v38_v56  ;;  %340 = vmatmul.mubr.f32.gmra.mxu1 %v38_v56  ;;  %v2919_v56 = vld [vmem:[%s3955_s4 + $0x18] sm:$0xff] }
  0x47   :  { %481 = vmatprep.subr.mxu0 %v2839_v57  ;;  %552 = vmatprep.subr.mxu1 %v2844_v58  ;;  %4071 = vst [vmem:[#allocation22_spill] sm:$0xff] %v2919_v56 }
  0x48   :  { %482 = vmatpush1.msra.mxu0 %v2851_v59  ;;  %553 = vmatpush1.msra.mxu1 %v2856_v60 }
  0x49   :  { %483 = vmatprep.subr.mxu0 %v2861_v61  ;;  %554 = vmatprep.subr.mxu1 %v2866_v62 }
  0x4a   :  { %232 = vmatprep.mubr.f32.mxu0 %v3964_v3  ;;  %345 = vmatprep.mubr.f32.mxu1 %v3964_v3  ;;  %v2926_v3 = vld [vmem:[%s3955_s4] sm:$0xff] }
  0x4b   :  { %484 = vmatpush1.msra.mxu0 %v2875_v63  ;;  %555 = vmatpush1.msra.mxu1 %v2880_v0  ;;  %4072 = vst [vmem:[#allocation23_spill] sm:$0xff] %v2926_v3 }
  0x4c   :  { %233 = vmatmul.mubr.f32.gmra.mxu0 %v39_v1  ;;  %346 = vmatmul.mubr.f32.gmra.mxu1 %v39_v1  ;;  %v2933_v1 = vld [vmem:[%s3955_s4 + $0x10] sm:$0xff] }
  0x4d   :  { %485 = vmatprep.subr.mxu0 %v2892_v11  ;;  %556 = vmatprep.subr.mxu1 %v2897_v20  ;;  %4073 = vst [vmem:[#allocation24_spill] sm:$0xff] %v2933_v1  ;;  %v384_v20 = vld [vmem:[%s3956_s1] sm:$0xff]  ;;  %v4074_v11 = vmov 0.0  }
  0x4e   :  { %486 = vmatpush1.msra.mxu0 %v2904_v29  ;;  %557 = vmatpush1.msra.mxu1 %v2909_v38 }
  0x4f   :  { %487 = vmatprep.subr.mxu0 %v2914_v47  ;;  %558 = vmatprep.subr.mxu1 %v2919_v56 }
  0x50   :  { %488 = vmatpush1.msra.mxu0 %v2926_v3  ;;  %521 = vmatprep.mubr.f32.mxu0 %v4074_v11 }
  0x51   :  { %559 = vmatpush1.msra.mxu1 %v2933_v1  ;;  %592 = vmatprep.mubr.f32.mxu1 %v4074_v11 }
  0x52   :  { %522 = vmatmul.mubr.f32.vlgmr.msra.gmra.mxu0 %v384_v20  ;;  %593 = vmatmul.mubr.f32.vlgmr.msra.gmra.mxu1 %v384_v20  ;;  %v4075_v20 = vld [vmem:[#allocation17_spill] sm:$0xff] }
  0x53   :  { %634 = vmatprep.subr.mxu0 %v2523_v2  ;;  %705 = vmatprep.subr.mxu1 %v2528_v4 }
  0x54   :  { %635 = vmatpush1.msra.mxu0 %v2533_v5  ;;  %706 = vmatpush1.msra.mxu1 %v2538_v6 }
  0x55   :  { %636 = vmatprep.subr.mxu0 %v2543_v7  ;;  %707 = vmatprep.subr.mxu1 %v2548_v8 }
  0x56   :  { %637 = vmatpush1.msra.mxu0 %v2557_v9  ;;  %708 = vmatpush1.msra.mxu1 %v2562_v10 }
  0x57   :  { %638 = vmatprep.subr.mxu0 %v2574_v12  ;;  %709 = vmatprep.subr.mxu1 %v2579_v13 }
  0x58   :  { %639 = vmatpush1.msra.mxu0 %v2586_v14  ;;  %710 = vmatpush1.msra.mxu1 %v2591_v15 }
  0x59   :  { %640 = vmatprep.subr.mxu0 %v2596_v16  ;;  %711 = vmatprep.subr.mxu1 %v2601_v17 }
  0x5a   :  { %641 = vmatpush1.msra.mxu0 %v2610_v18  ;;  %712 = vmatpush1.msra.mxu1 %v2615_v19 }
  0x5b   :  { %642 = vmatprep.subr.mxu0 %v2627_v21  ;;  %713 = vmatprep.subr.mxu1 %v2632_v22 }
  0x5c   :  { %643 = vmatpush1.msra.mxu0 %v2639_v23  ;;  %714 = vmatpush1.msra.mxu1 %v2644_v24 }
  0x5d   :  { %644 = vmatprep.subr.mxu0 %v2649_v25  ;;  %715 = vmatprep.subr.mxu1 %v2654_v26 }
  0x5e   :  { %645 = vmatpush1.msra.mxu0 %v2663_v27  ;;  %716 = vmatpush1.msra.mxu1 %v2668_v28 }
  0x5f   :  { %646 = vmatprep.subr.mxu0 %v2680_v30  ;;  %717 = vmatprep.subr.mxu1 %v2685_v31 }
  0x60   :  { %647 = vmatpush1.msra.mxu0 %v2692_v32  ;;  %718 = vmatpush1.msra.mxu1 %v2697_v33 }
  0x61   :  { %648 = vmatprep.subr.mxu0 %v2702_v34  ;;  %719 = vmatprep.subr.mxu1 %v2707_v35 }
  0x62   :  { %649 = vmatpush1.msra.mxu0 %v2716_v36  ;;  %720 = vmatpush1.msra.mxu1 %v2721_v37 }
  0x63   :  { %650 = vmatprep.subr.mxu0 %v2733_v39  ;;  %721 = vmatprep.subr.mxu1 %v2738_v40 }
  0x64   :  { %651 = vmatpush1.msra.mxu0 %v2745_v41  ;;  %722 = vmatpush1.msra.mxu1 %v2750_v42 }
  0x65   :  { %652 = vmatprep.subr.mxu0 %v2755_v43  ;;  %723 = vmatprep.subr.mxu1 %v2760_v44 }
  0x66   :  { %653 = vmatpush1.msra.mxu0 %v2769_v45  ;;  %724 = vmatpush1.msra.mxu1 %v2774_v46 }
  0x67   :  { %654 = vmatprep.subr.mxu0 %v2786_v48  ;;  %725 = vmatprep.subr.mxu1 %v2791_v49 }
  0x68   :  { %655 = vmatpush1.msra.mxu0 %v2798_v50  ;;  %726 = vmatpush1.msra.mxu1 %v2803_v51 }
  0x69   :  { %656 = vmatprep.subr.mxu0 %v2808_v52  ;;  %727 = vmatprep.subr.mxu1 %v2813_v53 }
  0x6a   :  { %657 = vmatpush1.msra.mxu0 %v2822_v54  ;;  %728 = vmatpush1.msra.mxu1 %v2827_v55  ;;  %v4076_v54 = vld [vmem:[#allocation18_spill] sm:$0xff] }
  0x6b   :  { %658 = vmatprep.subr.mxu0 %v2839_v57  ;;  %729 = vmatprep.subr.mxu1 %v2844_v58 }
  0x6c   :  { %659 = vmatpush1.msra.mxu0 %v2851_v59  ;;  %730 = vmatpush1.msra.mxu1 %v2856_v60 }
  0x6d   :  { %660 = vmatprep.subr.mxu0 %v2861_v61  ;;  %731 = vmatprep.subr.mxu1 %v2866_v62 }
  0x6e   :  { %661 = vmatpush1.msra.mxu0 %v2875_v63  ;;  %732 = vmatpush1.msra.mxu1 %v2880_v0 }
  0x6f   :  { %662 = vmatprep.subr.mxu0 %v4075_v20  ;;  %733 = vmatprep.subr.mxu1 %v4076_v54  ;;  %v106_v54 = vlaneseq }
  0x70   :  { %663 = vmatpush1.msra.mxu0 %v2904_v29  ;;  %734 = vmatpush1.msra.mxu1 %v2909_v38 }
  0x71   :  { %664 = vmatprep.subr.mxu0 %v2914_v47  ;;  %735 = vmatprep.subr.mxu1 %v2919_v56  ;;  %v107_v29 = vshrl.u32 %v106_v54, 7 }
  0x72   :  { %665 = vmatpush1.msra.mxu0 %v2926_v3  ;;  %698 = vmatprep.mubr.f32.mxu0 %v4074_v11  ;;  %v104_v3 = vld [vmem:[%s3957_s5] sm:$0xf] }
  0x73   :  { %736 = vmatpush1.msra.mxu1 %v2933_v1  ;;  %769 = vmatprep.mubr.f32.mxu1 %v4074_v11  ;;  %v108_v47 = vsub.s32 0, %v107_v29  ;;  %v116_v56 = vsub.s32 2, %v107_v29  ;;  %v112_v11 = vsub.s32 1, %v107_v29 }
  0x74   :  { %811 = vmatprep.subr.mxu0 %v2523_v2  ;;  %882 = vmatprep.subr.mxu1 %v2528_v4  ;;  %v120_v2 = vsub.s32 3, %v107_v29 }
  0x75   :  { %v109_v63 = vrot.slane %v104_v3, %v108_v47  ;;  %v3023_v4 = vrot.slane %v104_v3, %v116_v56  ;;  %v113_v61 = vrot.slane %v104_v3, %v112_v11 }
  0x76   :  { %v3025_v60 = vrot.slane %v104_v3, %v120_v2 }
  0xe2   :  { %v3012_v20 = vpop.f32.mrf.mxu0  ;;  %v3014_v38 = vpop.f32.mrf.mxu1 }
  0xe4   :  { %v3019_v0 = vpop.f32.mrf.mxu0  ;;  %v3021_v1 = vpop.f32.mrf.mxu1 }
  0xe8   :  { %v198_v54 = vpop.f32.mrf.mxu0  ;;  %v311_v62 = vpop.f32.mrf.mxu1 }
  0xe9   :  { %v3027_v59 = vadd.f32 %v198_v54, %v109_v63  ;;  %v3030_v58 = vadd.f32 %v311_v62, %v3023_v4 }
  0xea   :  { %v200_v57 = vpop.f32.mrf.mxu0  ;;  %v313_v55 = vpop.f32.mrf.mxu1 }
  0xeb   :  { %4077 = vst [vmem:[#allocation25_spill] sm:$0xff] %v3027_v59  ;;  %4078 = vst [vmem:[#allocation26_spill] sm:$0xff] %v3030_v58  ;;  %v3032_v53 = vadd.f32 %v200_v57, %v113_v61  ;;  %v3035_v52 = vadd.f32 %v313_v55, %v3025_v60 }
  0xed   :  { %4079 = vst [vmem:[#allocation27_spill] sm:$0xff] %v3032_v53  ;;  %4080 = vst [vmem:[#allocation28_spill] sm:$0xff] %v3035_v52 }
  0xee   :  { %v204_v29 = vpop.f32.mrf.mxu0  ;;  %v317_v47 = vpop.f32.mrf.mxu1 }
  0xef   :  { %v3037_v56 = vadd.f32 %v204_v29, %v109_v63  ;;  %v3040_v11 = vadd.f32 %v317_v47, %v3023_v4 }
  0xf0   :  { %v206_v3 = vpop.f32.mrf.mxu0  ;;  %v319_v2 = vpop.f32.mrf.mxu1 }
  0xf1   :  { %4081 = vst [vmem:[#allocation29_spill] sm:$0xff] %v3037_v56  ;;  %4082 = vst [vmem:[#allocation30_spill] sm:$0xff] %v3040_v11  ;;  %v3042_v54 = vadd.f32 %v206_v3, %v113_v61  ;;  %v3045_v62 = vadd.f32 %v319_v2, %v3025_v60 }
  0xf3   :  { %4083 = vst [vmem:[#allocation31_spill] sm:$0xff] %v3042_v54  ;;  %4084 = vst [vmem:[#allocation32_spill] sm:$0xff] %v3045_v62 }
  0xf4   :  { %v210_v58 = vpop.f32.mrf.mxu0  ;;  %v323_v57 = vpop.f32.mrf.mxu1 }
  0xf5   :  { %v3047_v53 = vadd.f32 %v210_v58, %v109_v63  ;;  %v3050_v55 = vadd.f32 %v323_v57, %v3023_v4 }
  0xf6   :  { %v212_v52 = vpop.f32.mrf.mxu0  ;;  %v325_v29 = vpop.f32.mrf.mxu1 }
  0xf7   :  { %4085 = vst [vmem:[#allocation33_spill] sm:$0xff] %v3047_v53  ;;  %4086 = vst [vmem:[#allocation34_spill] sm:$0xff] %v3050_v55  ;;  %v3052_v56 = vadd.f32 %v212_v52, %v113_v61  ;;  %v3055_v47 = vadd.f32 %v325_v29, %v3025_v60 }
  0xf9   :  { %4087 = vst [vmem:[#allocation35_spill] sm:$0xff] %v3052_v56  ;;  %4088 = vst [vmem:[#allocation36_spill] sm:$0xff] %v3055_v47 }
  0xfa   :  { %v216_v11 = vpop.f32.mrf.mxu0  ;;  %v329_v3 = vpop.f32.mrf.mxu1 }
  0xfb   :  { %v3057_v54 = vadd.f32 %v216_v11, %v109_v63  ;;  %v3060_v2 = vadd.f32 %v329_v3, %v3023_v4 }
  0xfc   :  { %v218_v62 = vpop.f32.mrf.mxu0  ;;  %v331_v58 = vpop.f32.mrf.mxu1 }
  0xfd   :  { %4089 = vst [vmem:[#allocation37_spill] sm:$0xff] %v3057_v54  ;;  %4090 = vst [vmem:[#allocation38_spill] sm:$0xff] %v3060_v2  ;;  %v3062_v53 = vadd.f32 %v218_v62, %v113_v61  ;;  %v3065_v57 = vadd.f32 %v331_v58, %v3025_v60 }
  0xff   :  { %4091 = vst [vmem:[#allocation39_spill] sm:$0xff] %v3062_v53  ;;  %4092 = vst [vmem:[#allocation40_spill] sm:$0xff] %v3065_v57 }
 0x100   :  { %v222_v55 = vpop.f32.mrf.mxu0  ;;  %v335_v52 = vpop.f32.mrf.mxu1 }
 0x101   :  { %v3067_v56 = vadd.f32 %v222_v55, %v109_v63  ;;  %v3070_v29 = vadd.f32 %v335_v52, %v3023_v4 }
 0x102   :  { %v224_v47 = vpop.f32.mrf.mxu0  ;;  %v337_v11 = vpop.f32.mrf.mxu1 }
 0x103   :  { %4093 = vst [vmem:[#allocation41_spill] sm:$0xff] %v3067_v56  ;;  %4094 = vst [vmem:[#allocation42_spill] sm:$0xff] %v3070_v29  ;;  %v3072_v54 = vadd.f32 %v224_v47, %v113_v61  ;;  %v3075_v3 = vadd.f32 %v337_v11, %v3025_v60 }
 0x105   :  { %4095 = vst [vmem:[#allocation43_spill] sm:$0xff] %v3072_v54  ;;  %4096 = vst [vmem:[#allocation44_spill] sm:$0xff] %v3075_v3 }
 0x106   :  { %v228_v2 = vpop.f32.mrf.mxu0  ;;  %v341_v62 = vpop.f32.mrf.mxu1 }
 0x107   :  { %v3077_v53 = vadd.f32 %v228_v2, %v109_v63  ;;  %v3080_v58 = vadd.f32 %v341_v62, %v3023_v4 }
 0x108   :  { %v230_v57 = vpop.f32.mrf.mxu0  ;;  %v343_v55 = vpop.f32.mrf.mxu1 }
 0x109   :  { %4097 = vst [vmem:[#allocation45_spill] sm:$0xff] %v3077_v53  ;;  %4098 = vst [vmem:[#allocation46_spill] sm:$0xff] %v3080_v58  ;;  %v3082_v56 = vadd.f32 %v230_v57, %v113_v61  ;;  %v3085_v52 = vadd.f32 %v343_v55, %v3025_v60  ;;  %v193_v57 = vadd.f32 %v3012_v20, %v109_v63 }
 0x10a   :  { %v195_v55 = vadd.f32 %v3019_v0, %v113_v61 }
 0x10b   :  { %4099 = vst [vmem:[#allocation47_spill] sm:$0xff] %v3082_v56  ;;  %4100 = vst [vmem:[#allocation48_spill] sm:$0xff] %v3085_v52 }
 0x10c   :  { %v234_v29 = vpop.f32.mrf.mxu0  ;;  %v347_v47 = vpop.f32.mrf.mxu1 }
 0x10d   :  { %v3087_v54 = vadd.f32 %v234_v29, %v109_v63  ;;  %v3090_v11 = vadd.f32 %v347_v47, %v3023_v4 }
 0x10e   :  { %v236_v3 = vpop.f32.mrf.mxu0  ;;  %v349_v2 = vpop.f32.mrf.mxu1 }
 0x10f   :  { %4101 = vst [vmem:[#allocation49_spill] sm:$0xff] %v3087_v54  ;;  %4102 = vst [vmem:[#allocation50_spill] sm:$0xff] %v3090_v11  ;;  %v3092_v53 = vadd.f32 %v236_v3, %v113_v61  ;;  %v3095_v62 = vadd.f32 %v349_v2, %v3025_v60  ;;  %v308_v3 = vadd.f32 %v3021_v1, %v3025_v60  ;;  %v385_v60 = vld [vmem:[%s3958_s2] sm:$0xff] }
 0x110   :  { %v306_v2 = vadd.f32 %v3014_v38, %v3023_v4 }
 0x111   :  { %4103 = vst [vmem:[#allocation51_spill] sm:$0xff] %v3092_v53  ;;  %4104 = vst [vmem:[#allocation52_spill] sm:$0xff] %v3095_v62 }
 0x112   :  { %v523_v58 = vpop.f32.mrf.mxu0  ;;  %v594_v54 = vpop.f32.mrf.mxu1 }
 0x113   :  { %v599_v52 = vadd.f32 %v523_v58, %v193_v57  ;;  %v601_v62 = vadd.f32 %v594_v54, %v306_v2  ;;  %v4109_v2 = vld [vmem:[#allocation9_spill] sm:$0xff] }
 0x114   :  { %v525_v56 = vpop.f32.mrf.mxu0  ;;  %v596_v11 = vpop.f32.mrf.mxu1 }
 0x115   :  { %v1991_v59 = vmul.f32 -1.442695, %v599_v52  ;;  %v600_v29 = vadd.f32 %v525_v56, %v195_v55  ;;  %v602_v53 = vadd.f32 %v596_v11, %v308_v3  ;;  %v4105_v55 = vld [vmem:[#allocation5_spill] sm:$0xff]  ;;  %v4108_v3 = vld [vmem:[#allocation8_spill] sm:$0xff] }
 0x117   :  { %2070 = vpow2.f32 %v1991_v59  ;;  %v1992_v47 = vmul.f32 -1.442695, %v600_v29  ;;  %v1993_v63 = vmul.f32 -1.442695, %v602_v53  ;;  %v4106_v29 = vld [vmem:[#allocation6_spill] sm:$0xff] }
 0x119   :  { %2072 = vpow2.f32 %v1992_v47  ;;  %v4107_v47 = vld [vmem:[#allocation7_spill] sm:$0xff] }
 0x11a   :  { %2074 = vpow2.f32 %v1993_v63  ;;  %v4110_v63 = vld [vmem:[#allocation10_spill] sm:$0xff] }
 0x124   :  { %v2071_v20 = vpop.eup %2070 }
 0x125   :  { %v606_v61 = vadd.f32 1.0, %v2071_v20  ;;  %v4111_v20 = vld [vmem:[#allocation11_spill] sm:$0xff] }
 0x126   :  { %v2073_v0 = vpop.eup %2072 }
 0x127   :  { %2076 = vrcp.f32 %v606_v61  ;;  %v612_v56 = vadd.f32 1.0, %v2073_v0  ;;  %v2075_v59 = vpop.eup %2074  ;;  %v4112_v61 = vld [vmem:[#allocation12_spill] sm:$0xff]  ;;  %v4113_v0 = vld [vmem:[#allocation13_spill] sm:$0xff] }
 0x128   :  { %2078 = vtanh.f32 %v601_v62  ;;  %v619_v11 = vadd.f32 1.0, %v2075_v59  ;;  %v4115_v59 = vld [vmem:[#allocation15_spill] sm:$0xff] }
 0x129   :  { %2080 = vrcp.f32 %v612_v56  ;;  %v4114_v56 = vld [vmem:[#allocation14_spill] sm:$0xff] }
 0x12a   :  { %2082 = vrcp.f32 %v619_v11  ;;  %v4120_v11 = vld [vmem:[#allocation20_spill] sm:$0xff] }
 0x134   :  { %v2077_v58 = vpop.eup %2076 }
 0x135   :  { %v2079_v1 = vpop.eup %2078 }
 0x136   :  { %v2081_v52 = vpop.eup %2080  ;;  %v623_v4 = vmul.f32 %v2079_v1, %v2077_v58  ;;  %v4116_v58 = vld [vmem:[#allocation16_spill] sm:$0xff]  ;;  %v4118_v1 = vld [vmem:[#allocation18_spill] sm:$0xff] }
 0x137   :  { %v622_v53 = vmul.f32 %v2081_v52, %v385_v60  ;;  %v2083_v54 = vpop.eup %2082  ;;  %v4117_v60 = vld [vmem:[#allocation17_spill] sm:$0xff]  ;;  %v4119_v52 = vld [vmem:[#allocation19_spill] sm:$0xff] }
 0x139   :  { %v3106_v38 = vadd.f32 %v623_v4, %v622_v53  ;;  %v4121_v4 = vld [vmem:[#allocation21_spill] sm:$0xff]  ;;  %v4122_v53 = vld [vmem:[#allocation22_spill] sm:$0xff] }
 0x13b   :  { %2084 = vtanh.f32 %v3106_v38 }
 0x148   :  { %v2085_v57 = vpop.eup %2084 }
 0x149   :  { %v626_v62 = vmul.f32 %v2085_v57, %v2083_v54  ;;  %v4123_v54 = vld [vmem:[#allocation23_spill] sm:$0xff]  ;;  %v4124_v57 = vmov 0.0  }
 0x14b   :  { %699 = vmatmul.mubr.f32.vlgmr.msra.gmra.mxu0 %v626_v62  ;;  %770 = vmatmul.mubr.f32.vlgmr.msra.gmra.mxu1 %v626_v62  ;;  %v4125_v62 = vld [vmem:[#allocation24_spill] sm:$0xff] }
 0x14c   :  { %812 = vmatpush1.msra.mxu0 %v2533_v5  ;;  %883 = vmatpush1.msra.mxu1 %v2538_v6 }
 0x14d   :  { %813 = vmatprep.subr.mxu0 %v2543_v7  ;;  %884 = vmatprep.subr.mxu1 %v2548_v8 }
 0x14e   :  { %814 = vmatpush1.msra.mxu0 %v2557_v9  ;;  %885 = vmatpush1.msra.mxu1 %v2562_v10 }
 0x14f   :  { %815 = vmatprep.subr.mxu0 %v2574_v12  ;;  %886 = vmatprep.subr.mxu1 %v2579_v13 }
 0x150   :  { %816 = vmatpush1.msra.mxu0 %v2586_v14  ;;  %887 = vmatpush1.msra.mxu1 %v2591_v15 }
 0x151   :  { %817 = vmatprep.subr.mxu0 %v2596_v16  ;;  %888 = vmatprep.subr.mxu1 %v2601_v17 }
 0x152   :  { %818 = vmatpush1.msra.mxu0 %v2610_v18  ;;  %889 = vmatpush1.msra.mxu1 %v2615_v19 }
 0x153   :  { %819 = vmatprep.subr.mxu0 %v2627_v21  ;;  %890 = vmatprep.subr.mxu1 %v2632_v22 }
 0x154   :  { %820 = vmatpush1.msra.mxu0 %v2639_v23  ;;  %891 = vmatpush1.msra.mxu1 %v2644_v24 }
 0x155   :  { %821 = vmatprep.subr.mxu0 %v2649_v25  ;;  %892 = vmatprep.subr.mxu1 %v2654_v26 }
 0x156   :  { %822 = vmatpush1.msra.mxu0 %v2663_v27  ;;  %893 = vmatpush1.msra.mxu1 %v2668_v28 }
 0x157   :  { %823 = vmatprep.subr.mxu0 %v2680_v30  ;;  %894 = vmatprep.subr.mxu1 %v2685_v31 }
 0x158   :  { %824 = vmatpush1.msra.mxu0 %v2692_v32  ;;  %895 = vmatpush1.msra.mxu1 %v2697_v33 }
 0x159   :  { %825 = vmatprep.subr.mxu0 %v2702_v34  ;;  %896 = vmatprep.subr.mxu1 %v2707_v35 }
 0x15a   :  { %826 = vmatpush1.msra.mxu0 %v2716_v36  ;;  %897 = vmatpush1.msra.mxu1 %v2721_v37 }
 0x15b   :  { %827 = vmatprep.subr.mxu0 %v2733_v39  ;;  %898 = vmatprep.subr.mxu1 %v2738_v40 }
 0x15c   :  { %828 = vmatpush1.msra.mxu0 %v2745_v41  ;;  %899 = vmatpush1.msra.mxu1 %v2750_v42 }
 0x15d   :  { %829 = vmatprep.subr.mxu0 %v2755_v43  ;;  %900 = vmatprep.subr.mxu1 %v2760_v44 }
 0x15e   :  { %830 = vmatpush1.msra.mxu0 %v2769_v45  ;;  %901 = vmatpush1.msra.mxu1 %v2774_v46 }
 0x15f   :  { %831 = vmatprep.subr.mxu0 %v2786_v48  ;;  %902 = vmatprep.subr.mxu1 %v2791_v49 }
 0x160   :  { %832 = vmatpush1.msra.mxu0 %v2798_v50  ;;  %903 = vmatpush1.msra.mxu1 %v2803_v51 }
 0x161   :  { %833 = vmatprep.subr.mxu0 %v4105_v55  ;;  %904 = vmatprep.subr.mxu1 %v4106_v29 }
 0x162   :  { %834 = vmatpush1.msra.mxu0 %v4107_v47  ;;  %905 = vmatpush1.msra.mxu1 %v4108_v3 }
 0x163   :  { %835 = vmatprep.subr.mxu0 %v4109_v2  ;;  %906 = vmatprep.subr.mxu1 %v4110_v63  ;;  %v4131_v63 = vld [vmem:[#allocation26_spill] sm:$0xff] }
 0x164   :  { %836 = vmatpush1.msra.mxu0 %v4111_v20  ;;  %907 = vmatpush1.msra.mxu1 %v4112_v61  ;;  %v4130_v20 = vld [vmem:[#allocation28_spill] sm:$0xff] }
 0x165   :  { %837 = vmatprep.subr.mxu0 %v4113_v0  ;;  %908 = vmatprep.subr.mxu1 %v4114_v56 }
 0x166   :  { %838 = vmatpush1.msra.mxu0 %v4115_v59  ;;  %909 = vmatpush1.msra.mxu1 %v4116_v58  ;;  %v4126_v58 = vld [vmem:[#allocation3_spill] sm:$0xff] }
 0x167   :  { %839 = vmatprep.subr.mxu0 %v4117_v60  ;;  %910 = vmatprep.subr.mxu1 %v4118_v1  ;;  %v4127_v60 = vld [vmem:[#allocation4_spill] sm:$0xff] }
 0x168   :  { %840 = vmatpush1.msra.mxu0 %v4119_v52  ;;  %911 = vmatpush1.msra.mxu1 %v4120_v11  ;;  %v4128_v52 = vld [vmem:[#allocation25_spill] sm:$0xff] }
 0x169   :  { %841 = vmatprep.subr.mxu0 %v4121_v4  ;;  %912 = vmatprep.subr.mxu1 %v4122_v53  ;;  %v4129_v4 = vld [vmem:[#allocation27_spill] sm:$0xff] }
 0x16a   :  { %842 = vmatpush1.msra.mxu0 %v4123_v54  ;;  %875 = vmatprep.mubr.f32.mxu0 %v4124_v57 }
 0x16b   :  { %913 = vmatpush1.msra.mxu1 %v4125_v62  ;;  %946 = vmatprep.mubr.f32.mxu1 %v4124_v57 }
 0x16c   :  { %988 = vmatprep.subr.mxu0 %v4126_v58  ;;  %1059 = vmatprep.subr.mxu1 %v4127_v60 }
 0x20b   :  { %v700_v1 = vpop.f32.mrf.mxu0  ;;  %v771_v53 = vpop.f32.mrf.mxu1 }
 0x20c   :  { %v776_v59 = vadd.f32 %v700_v1, %v4128_v52  ;;  %v778_v57 = vadd.f32 %v771_v53, %v4131_v63 }
 0x20d   :  { %v702_v11 = vpop.f32.mrf.mxu0  ;;  %v773_v61 = vpop.f32.mrf.mxu1 }
 0x20e   :  { %v1994_v56 = vmul.f32 -1.442695, %v776_v59  ;;  %v777_v0 = vadd.f32 %v702_v11, %v4129_v4  ;;  %v779_v62 = vadd.f32 %v773_v61, %v4130_v20 }
 0x210   :  { %2086 = vpow2.f32 %v1994_v56  ;;  %v1995_v54 = vmul.f32 -1.442695, %v777_v0  ;;  %v1996_v2 = vmul.f32 -1.442695, %v779_v62  ;;  %v4155_v62 = vld [vmem:[#allocation30_spill] sm:$0xff] }
 0x212   :  { %2088 = vpow2.f32 %v1995_v54 }
 0x213   :  { %2090 = vtanh.f32 %v778_v57 }
 0x214   :  { %2092 = vpow2.f32 %v1996_v2  ;;  %v4154_v2 = vld [vmem:[#allocation32_spill] sm:$0xff] }
 0x21d   :  { %v2087_v58 = vpop.eup %2086 }
 0x21e   :  { %v783_v3 = vadd.f32 1.0, %v2087_v58 }
 0x21f   :  { %v2089_v60 = vpop.eup %2088 }
 0x220   :  { %2094 = vrcp.f32 %v783_v3  ;;  %v789_v1 = vadd.f32 1.0, %v2089_v60  ;;  %v2091_v59 = vpop.eup %2090 }
 0x221   :  { %v2093_v52 = vpop.eup %2092 }
 0x222   :  { %2096 = vrcp.f32 %v789_v1  ;;  %v796_v4 = vadd.f32 1.0, %v2093_v52 }
 0x224   :  { %2098 = vrcp.f32 %v796_v4 }
 0x22d   :  { %v2095_v56 = vpop.eup %2094 }
 0x22e   :  { %v800_v11 = vmul.f32 %v2095_v56, %v2091_v59 }
 0x22f   :  { %v2097_v0 = vpop.eup %2096 }
 0x230   :  { %v799_v54 = vmul.f32 %v2097_v0, %v3106_v38 }
 0x231   :  { %v2099_v63 = vpop.eup %2098 }
 0x232   :  { %v3180_v20 = vadd.f32 %v800_v11, %v799_v54 }
 0x234   :  { %2100 = vtanh.f32 %v3180_v20 }
 0x241   :  { %v2101_v61 = vpop.eup %2100 }
 0x242   :  { %v803_v53 = vmul.f32 %v2101_v61, %v2099_v63 }
 0x244   :  { %876 = vmatmul.mubr.f32.vlgmr.msra.gmra.mxu0 %v803_v53  ;;  %947 = vmatmul.mubr.f32.vlgmr.msra.gmra.mxu1 %v803_v53 }
 0x245   :  { %989 = vmatpush1.msra.mxu0 %v2533_v5  ;;  %1060 = vmatpush1.msra.mxu1 %v2538_v6  ;;  %v4132_v5 = vld [vmem:[#allocation8_spill] sm:$0xff]  ;;  %v4133_v6 = vld [vmem:[#allocation9_spill] sm:$0xff] }
 0x246   :  { %990 = vmatprep.subr.mxu0 %v2543_v7  ;;  %1061 = vmatprep.subr.mxu1 %v2548_v8  ;;  %v4134_v7 = vld [vmem:[#allocation10_spill] sm:$0xff]  ;;  %v4135_v8 = vld [vmem:[#allocation11_spill] sm:$0xff] }
 0x247   :  { %991 = vmatpush1.msra.mxu0 %v2557_v9  ;;  %1062 = vmatpush1.msra.mxu1 %v2562_v10  ;;  %v4136_v9 = vld [vmem:[#allocation12_spill] sm:$0xff]  ;;  %v4137_v10 = vld [vmem:[#allocation13_spill] sm:$0xff] }
 0x248   :  { %992 = vmatprep.subr.mxu0 %v2574_v12  ;;  %1063 = vmatprep.subr.mxu1 %v2579_v13  ;;  %v4138_v12 = vld [vmem:[#allocation14_spill] sm:$0xff]  ;;  %v4139_v13 = vld [vmem:[#allocation15_spill] sm:$0xff] }
 0x249   :  { %993 = vmatpush1.msra.mxu0 %v2586_v14  ;;  %1064 = vmatpush1.msra.mxu1 %v2591_v15  ;;  %v4140_v14 = vld [vmem:[#allocation16_spill] sm:$0xff]  ;;  %v4141_v15 = vld [vmem:[#allocation17_spill] sm:$0xff] }
 0x24a   :  { %994 = vmatprep.subr.mxu0 %v2596_v16  ;;  %1065 = vmatprep.subr.mxu1 %v2601_v17  ;;  %v4142_v16 = vld [vmem:[#allocation18_spill] sm:$0xff]  ;;  %v4143_v17 = vld [vmem:[#allocation19_spill] sm:$0xff] }
 0x24b   :  { %995 = vmatpush1.msra.mxu0 %v2610_v18  ;;  %1066 = vmatpush1.msra.mxu1 %v2615_v19  ;;  %v4144_v18 = vld [vmem:[#allocation20_spill] sm:$0xff]  ;;  %v4145_v19 = vld [vmem:[#allocation21_spill] sm:$0xff] }
 0x24c   :  { %996 = vmatprep.subr.mxu0 %v2627_v21  ;;  %1067 = vmatprep.subr.mxu1 %v2632_v22  ;;  %v4146_v21 = vld [vmem:[#allocation22_spill] sm:$0xff]  ;;  %v4147_v22 = vld [vmem:[#allocation23_spill] sm:$0xff] }
 0x24d   :  { %997 = vmatpush1.msra.mxu0 %v2639_v23  ;;  %1068 = vmatpush1.msra.mxu1 %v2644_v24  ;;  %v4148_v23 = vmov 0.0   ;;  %v4149_v24 = vld [vmem:[#allocation24_spill] sm:$0xff] }
 0x24e   :  { %998 = vmatprep.subr.mxu0 %v2649_v25  ;;  %1069 = vmatprep.subr.mxu1 %v2654_v26  ;;  %v3250_v25 = vld [vmem:[%s3955_s4 + $0x1e8] sm:$0xff]  ;;  %v3256_v26 = vld [vmem:[%s3955_s4 + $0x1f8] sm:$0xff] }
 0x24f   :  { %999 = vmatpush1.msra.mxu0 %v2663_v27  ;;  %1070 = vmatpush1.msra.mxu1 %v2668_v28  ;;  %4150 = vst [vmem:[#allocation5_spill] sm:$0xff] %v3250_v25  ;;  %4151 = vst [vmem:[#allocation6_spill] sm:$0xff] %v3256_v26  ;;  %v4152_v28 = vld [vmem:[#allocation29_spill] sm:$0xff] }
 0x250   :  { %1000 = vmatprep.subr.mxu0 %v2680_v30  ;;  %1071 = vmatprep.subr.mxu1 %v2685_v31 }
 0x251   :  { %1001 = vmatpush1.msra.mxu0 %v2692_v32  ;;  %1072 = vmatpush1.msra.mxu1 %v2697_v33  ;;  %v4153_v33 = vld [vmem:[#allocation31_spill] sm:$0xff] }
 0x252   :  { %1002 = vmatprep.subr.mxu0 %v2702_v34  ;;  %1073 = vmatprep.subr.mxu1 %v2707_v35 }
 0x253   :  { %1003 = vmatpush1.msra.mxu0 %v2716_v36  ;;  %1074 = vmatpush1.msra.mxu1 %v2721_v37 }
 0x254   :  { %1004 = vmatprep.subr.mxu0 %v2733_v39  ;;  %1075 = vmatprep.subr.mxu1 %v2738_v40 }
 0x255   :  { %1005 = vmatpush1.msra.mxu0 %v2745_v41  ;;  %1076 = vmatpush1.msra.mxu1 %v2750_v42 }
 0x256   :  { %1006 = vmatprep.subr.mxu0 %v2755_v43  ;;  %1077 = vmatprep.subr.mxu1 %v2760_v44 }
 0x257   :  { %1007 = vmatpush1.msra.mxu0 %v2769_v45  ;;  %1078 = vmatpush1.msra.mxu1 %v2774_v46 }
 0x258   :  { %1008 = vmatprep.subr.mxu0 %v2786_v48  ;;  %1079 = vmatprep.subr.mxu1 %v2791_v49 }
 0x259   :  { %1009 = vmatpush1.msra.mxu0 %v2798_v50  ;;  %1080 = vmatpush1.msra.mxu1 %v2803_v51 }
 0x25a   :  { %1010 = vmatprep.subr.mxu0 %v4105_v55  ;;  %1081 = vmatprep.subr.mxu1 %v4106_v29 }
 0x25b   :  { %1011 = vmatpush1.msra.mxu0 %v4107_v47  ;;  %1082 = vmatpush1.msra.mxu1 %v4132_v5 }
 0x25c   :  { %1012 = vmatprep.subr.mxu0 %v4133_v6  ;;  %1083 = vmatprep.subr.mxu1 %v4134_v7 }
 0x25d   :  { %1013 = vmatpush1.msra.mxu0 %v4135_v8  ;;  %1084 = vmatpush1.msra.mxu1 %v4136_v9 }
 0x25e   :  { %1014 = vmatprep.subr.mxu0 %v4137_v10  ;;  %1085 = vmatprep.subr.mxu1 %v4138_v12 }
 0x25f   :  { %1015 = vmatpush1.msra.mxu0 %v4139_v13  ;;  %1086 = vmatpush1.msra.mxu1 %v4140_v14 }
 0x260   :  { %1016 = vmatprep.subr.mxu0 %v4141_v15  ;;  %1087 = vmatprep.subr.mxu1 %v4142_v16 }
 0x261   :  { %1017 = vmatpush1.msra.mxu0 %v4143_v17  ;;  %1088 = vmatpush1.msra.mxu1 %v4144_v18 }
 0x262   :  { %1018 = vmatprep.subr.mxu0 %v4145_v19  ;;  %1089 = vmatprep.subr.mxu1 %v4146_v21 }
 0x263   :  { %1019 = vmatpush1.msra.mxu0 %v4147_v22  ;;  %1052 = vmatprep.mubr.f32.mxu0 %v4148_v23 }
 0x264   :  { %1090 = vmatpush1.msra.mxu1 %v4149_v24  ;;  %1123 = vmatprep.mubr.f32.mxu1 %v4148_v23 }
 0x265   :  { %1165 = vmatprep.subr.mxu0 %v3250_v25  ;;  %1236 = vmatprep.subr.mxu1 %v3256_v26 }
 0x304   :  { %v877_v27 = vpop.f32.mrf.mxu0  ;;  %v948_v35 = vpop.f32.mrf.mxu1 }
 0x305   :  { %v953_v30 = vadd.f32 %v877_v27, %v4152_v28  ;;  %v955_v58 = vadd.f32 %v948_v35, %v4155_v62  ;;  %v3294_v35 = vld [vmem:[%s3955_s4 + $0x1c0] sm:$0xff]  ;;  %v3324_v62 = vld [vmem:[%s3955_s4 + $0x1b0] sm:$0xff] }
 0x306   :  { %v879_v31 = vpop.f32.mrf.mxu0  ;;  %v950_v3 = vpop.f32.mrf.mxu1 }
 0x307   :  { %v1997_v32 = vmul.f32 -1.442695, %v953_v30  ;;  %v954_v34 = vadd.f32 %v879_v31, %v4153_v33  ;;  %v956_v57 = vadd.f32 %v950_v3, %v4154_v2  ;;  %v3282_v33 = vld [vmem:[%s3955_s4 + $0x1c8] sm:$0xff]  ;;  %v3312_v2 = vld [vmem:[%s3955_s4 + $0x1b8] sm:$0xff] }
 0x308   :  { %v3306_v3 = vld [vmem:[%s3955_s4 + $0x1a8] sm:$0xff] }
 0x309   :  { %2102 = vpow2.f32 %v1997_v32  ;;  %v1998_v38 = vmul.f32 -1.442695, %v954_v34  ;;  %v1999_v60 = vmul.f32 -1.442695, %v956_v57  ;;  %v3270_v32 = vld [vmem:[%s3955_s4 + $0x1e0] sm:$0xff]  ;;  %v3288_v34 = vld [vmem:[%s3955_s4 + $0x1d8] sm:$0xff] }
 0x30a   :  { %v3318_v57 = vld [vmem:[%s3955_s4 + $0x1a0] sm:$0xff] }
 0x30b   :  { %2104 = vpow2.f32 %v1998_v38  ;;  %v3300_v38 = vld [vmem:[%s3955_s4 + $0x1d0] sm:$0xff] }
 0x30c   :  { %2106 = vtanh.f32 %v955_v58  ;;  %v3330_v58 = vld [vmem:[%s3955_s4 + $0x188] sm:$0xff] }
 0x30d   :  { %2108 = vpow2.f32 %v1999_v60  ;;  %v3336_v60 = vld [vmem:[%s3955_s4 + $0x198] sm:$0xff] }
 0x316   :  { %v2103_v1 = vpop.eup %2102 }
 0x317   :  { %v960_v59 = vadd.f32 1.0, %v2103_v1  ;;  %v3342_v1 = vld [vmem:[%s3955_s4 + $0x180] sm:$0xff] }
 0x318   :  { %v2105_v52 = vpop.eup %2104 }
 0x319   :  { %2110 = vrcp.f32 %v960_v59  ;;  %v966_v56 = vadd.f32 1.0, %v2105_v52  ;;  %v2107_v11 = vpop.eup %2106  ;;  %v3348_v59 = vld [vmem:[%s3955_s4 + $0x190] sm:$0xff]  ;;  %v3354_v52 = vld [vmem:[%s3955_s4 + $0x168] sm:$0xff] }
 0x31a   :  { %v2109_v0 = vpop.eup %2108 }
 0x31b   :  { %2112 = vrcp.f32 %v966_v56  ;;  %v973_v61 = vadd.f32 1.0, %v2109_v0  ;;  %v3360_v56 = vld [vmem:[%s3955_s4 + $0x178] sm:$0xff]  ;;  %v3372_v0 = vld [vmem:[%s3955_s4 + $0x170] sm:$0xff] }
 0x31d   :  { %2114 = vrcp.f32 %v973_v61  ;;  %v3396_v61 = vld [vmem:[%s3955_s4 + $0x150] sm:$0xff] }
 0x326   :  { %v2111_v4 = vpop.eup %2110 }
 0x327   :  { %v977_v54 = vmul.f32 %v2111_v4, %v2107_v11  ;;  %v3366_v11 = vld [vmem:[%s3955_s4 + $0x160] sm:$0xff]  ;;  %v3378_v4 = vld [vmem:[%s3955_s4 + $0x148] sm:$0xff] }
 0x328   :  { %v2113_v63 = vpop.eup %2112 }
 0x329   :  { %v976_v53 = vmul.f32 %v2113_v63, %v3180_v20  ;;  %v3276_v20 = vld [vmem:[%s3955_s4 + $0x1f0] sm:$0xff]  ;;  %v3390_v63 = vld [vmem:[%s3955_s4 + $0x140] sm:$0xff] }
 0x32a   :  { %v2115_v28 = vpop.eup %2114 }
 0x32b   :  { %v3264_v27 = vadd.f32 %v977_v54, %v976_v53  ;;  %v3384_v54 = vld [vmem:[%s3955_s4 + $0x158] sm:$0xff]  ;;  %v3402_v53 = vld [vmem:[%s3955_s4 + $0x128] sm:$0xff] }
 0x32c   :  { %4156 = vst [vmem:[#allocation7_spill] sm:$0xff] %v3402_v53 }
 0x32d   :  { %2116 = vtanh.f32 %v3264_v27 }
 0x33a   :  { %v2117_v30 = vpop.eup %2116 }
 0x33b   :  { %v980_v31 = vmul.f32 %v2117_v30, %v2115_v28  ;;  %v3408_v28 = vld [vmem:[%s3955_s4 + $0x138] sm:$0xff]  ;;  %v3414_v30 = vld [vmem:[%s3955_s4 + $0x120] sm:$0xff] }
 0x33c   :  { %4157 = vst [vmem:[#allocation3_spill] sm:$0xff] %v3408_v28 }
 0x33d   :  { %1053 = vmatmul.mubr.f32.vlgmr.msra.gmra.mxu0 %v980_v31  ;;  %1124 = vmatmul.mubr.f32.vlgmr.msra.gmra.mxu1 %v980_v31  ;;  %v3420_v31 = vld [vmem:[%s3955_s4 + $0x130] sm:$0xff] }
 0x33e   :  { %1166 = vmatpush1.msra.mxu0 %v3270_v32  ;;  %1237 = vmatpush1.msra.mxu1 %v3276_v20 }
 0x33f   :  { %1167 = vmatprep.subr.mxu0 %v3282_v33  ;;  %1238 = vmatprep.subr.mxu1 %v3288_v34 }
 0x340   :  { %1168 = vmatpush1.msra.mxu0 %v3294_v35  ;;  %1239 = vmatpush1.msra.mxu1 %v3300_v38 }
 0x341   :  { %1169 = vmatprep.subr.mxu0 %v3306_v3  ;;  %1240 = vmatprep.subr.mxu1 %v3312_v2 }
 0x342   :  { %1170 = vmatpush1.msra.mxu0 %v3318_v57  ;;  %1241 = vmatpush1.msra.mxu1 %v3324_v62 }
 0x343   :  { %1171 = vmatprep.subr.mxu0 %v3330_v58  ;;  %1242 = vmatprep.subr.mxu1 %v3336_v60 }
 0x344   :  { %1172 = vmatpush1.msra.mxu0 %v3342_v1  ;;  %1243 = vmatpush1.msra.mxu1 %v3348_v59 }
 0x345   :  { %1173 = vmatprep.subr.mxu0 %v3354_v52  ;;  %1244 = vmatprep.subr.mxu1 %v3360_v56 }
 0x346   :  { %1174 = vmatpush1.msra.mxu0 %v3366_v11  ;;  %1245 = vmatpush1.msra.mxu1 %v3372_v0 }
 0x347   :  { %1175 = vmatprep.subr.mxu0 %v3378_v4  ;;  %1246 = vmatprep.subr.mxu1 %v3384_v54 }
 0x348   :  { %1176 = vmatpush1.msra.mxu0 %v3390_v63  ;;  %1247 = vmatpush1.msra.mxu1 %v3396_v61 }
 0x349   :  { %1177 = vmatprep.subr.mxu0 %v3402_v53  ;;  %1248 = vmatprep.subr.mxu1 %v3408_v28  ;;  %v3426_v53 = vld [vmem:[%s3955_s4 + $0x108] sm:$0xff]  ;;  %v3432_v28 = vld [vmem:[%s3955_s4 + $0x118] sm:$0xff] }
 0x34a   :  { %1178 = vmatpush1.msra.mxu0 %v3414_v30  ;;  %1249 = vmatpush1.msra.mxu1 %v3420_v31 }
 0x34b   :  { %1179 = vmatprep.subr.mxu0 %v3426_v53  ;;  %1250 = vmatprep.subr.mxu1 %v3432_v28 }
 0x34c   :  { %1180 = vmatpush1.msra.mxu0 %v2716_v36  ;;  %1251 = vmatpush1.msra.mxu1 %v2721_v37  ;;  %v4158_v37 = vld [vmem:[#allocation33_spill] sm:$0xff] }
 0x34d   :  { %1181 = vmatprep.subr.mxu0 %v2733_v39  ;;  %1252 = vmatprep.subr.mxu1 %v2738_v40 }
 0x34e   :  { %1182 = vmatpush1.msra.mxu0 %v2745_v41  ;;  %1253 = vmatpush1.msra.mxu1 %v2750_v42  ;;  %v4159_v42 = vld [vmem:[#allocation35_spill] sm:$0xff] }
 0x34f   :  { %1183 = vmatprep.subr.mxu0 %v2755_v43  ;;  %1254 = vmatprep.subr.mxu1 %v2760_v44 }
 0x350   :  { %1184 = vmatpush1.msra.mxu0 %v2769_v45  ;;  %1255 = vmatpush1.msra.mxu1 %v2774_v46 }
 0x351   :  { %1185 = vmatprep.subr.mxu0 %v2786_v48  ;;  %1256 = vmatprep.subr.mxu1 %v2791_v49  ;;  %v4160_v48 = vld [vmem:[#allocation36_spill] sm:$0xff] }
 0x352   :  { %1186 = vmatpush1.msra.mxu0 %v2798_v50  ;;  %1257 = vmatpush1.msra.mxu1 %v2803_v51  ;;  %v4161_v50 = vld [vmem:[#allocation34_spill] sm:$0xff] }
 0x353   :  { %1187 = vmatprep.subr.mxu0 %v4105_v55  ;;  %1258 = vmatprep.subr.mxu1 %v4106_v29 }
 0x354   :  { %1188 = vmatpush1.msra.mxu0 %v4107_v47  ;;  %1259 = vmatpush1.msra.mxu1 %v4132_v5 }
 0x355   :  { %1189 = vmatprep.subr.mxu0 %v4133_v6  ;;  %1260 = vmatprep.subr.mxu1 %v4134_v7 }
 0x356   :  { %1190 = vmatpush1.msra.mxu0 %v4135_v8  ;;  %1261 = vmatpush1.msra.mxu1 %v4136_v9 }
 0x357   :  { %1191 = vmatprep.subr.mxu0 %v4137_v10  ;;  %1262 = vmatprep.subr.mxu1 %v4138_v12 }
 0x358   :  { %1192 = vmatpush1.msra.mxu0 %v4139_v13  ;;  %1263 = vmatpush1.msra.mxu1 %v4140_v14 }
 0x359   :  { %1193 = vmatprep.subr.mxu0 %v4141_v15  ;;  %1264 = vmatprep.subr.mxu1 %v4142_v16 }
 0x35a   :  { %1194 = vmatpush1.msra.mxu0 %v4143_v17  ;;  %1265 = vmatpush1.msra.mxu1 %v4144_v18 }
 0x35b   :  { %1195 = vmatprep.subr.mxu0 %v4145_v19  ;;  %1266 = vmatprep.subr.mxu1 %v4146_v21  ;;  %v4162_v19 = vld [vmem:[#allocation7_spill] sm:$0xff] }
 0x35c   :  { %1196 = vmatpush1.msra.mxu0 %v4147_v22  ;;  %1229 = vmatprep.mubr.f32.mxu0 %v4148_v23  ;;  %v4163_v21 = vld [vmem:[#allocation3_spill] sm:$0xff] }
 0x35d   :  { %1267 = vmatpush1.msra.mxu1 %v4149_v24  ;;  %1300 = vmatprep.mubr.f32.mxu1 %v4148_v23  ;;  %v3512_v22 = vld [vmem:[%s3955_s4 + $0x100] sm:$0xff]  ;;  %v3518_v24 = vld [vmem:[%s3955_s4 + $0x110] sm:$0xff] }
 0x35e   :  { %1342 = vmatprep.subr.mxu0 %v3250_v25  ;;  %1413 = vmatprep.subr.mxu1 %v3256_v26 }
 0x3fd   :  { %v1054_v36 = vpop.f32.mrf.mxu0  ;;  %v1125_v44 = vpop.f32.mrf.mxu1 }
 0x3fe   :  { %v1130_v39 = vadd.f32 %v1054_v36, %v4158_v37  ;;  %v1132_v51 = vadd.f32 %v1125_v44, %v4161_v50  ;;  %v3530_v36 = vld [vmem:[%s3955_s4 + $0xf8] sm:$0xff]  ;;  %v3536_v37 = vld [vmem:[%s3955_s4 + $0xe0] sm:$0xff]  ;;  %v3572_v44 = vld [vmem:[%s3955_s4 + $0xa8] sm:$0xff] }
 0x3ff   :  { %v1056_v40 = vpop.f32.mrf.mxu0  ;;  %v1127_v46 = vpop.f32.mrf.mxu1  ;;  %v3602_v50 = vld [vmem:[%s3955_s4 + $0x98] sm:$0xff] }
 0x400   :  { %v2000_v41 = vmul.f32 -1.442695, %v1130_v39  ;;  %v1131_v43 = vadd.f32 %v1056_v40, %v4159_v42  ;;  %v1133_v49 = vadd.f32 %v1127_v46, %v4160_v48  ;;  %v3542_v39 = vld [vmem:[%s3955_s4 + $0xf0] sm:$0xff]  ;;  %v3548_v40 = vld [vmem:[%s3955_s4 + $0xc8] sm:$0xff]  ;;  %v3560_v42 = vld [vmem:[%s3955_s4 + $0xc0] sm:$0xff] }
 0x401   :  { %v3584_v46 = vld [vmem:[%s3955_s4 + $0xa0] sm:$0xff]  ;;  %v3590_v48 = vld [vmem:[%s3955_s4 + $0xb0] sm:$0xff] }
 0x402   :  { %2118 = vpow2.f32 %v2000_v41  ;;  %v2001_v45 = vmul.f32 -1.442695, %v1131_v43  ;;  %v2002_v55 = vmul.f32 -1.442695, %v1133_v49  ;;  %v3554_v41 = vld [vmem:[%s3955_s4 + $0xd8] sm:$0xff]  ;;  %v3566_v43 = vld [vmem:[%s3955_s4 + $0xd0] sm:$0xff] }
 0x403   :  { %v3596_v49 = vld [vmem:[%s3955_s4 + $0x88] sm:$0xff] }
 0x404   :  { %2120 = vpow2.f32 %v2001_v45  ;;  %v3578_v45 = vld [vmem:[%s3955_s4 + $0xb8] sm:$0xff] }
 0x405   :  { %2122 = vtanh.f32 %v1132_v51  ;;  %v3608_v51 = vld [vmem:[%s3955_s4 + $0x80] sm:$0xff] }
 0x406   :  { %2124 = vpow2.f32 %v2002_v55  ;;  %v3614_v55 = vld [vmem:[%s3955_s4 + $0x90] sm:$0xff] }
 0x407   :  { %4164 = vst [vmem:[#allocation4_spill] sm:$0xff] %v3614_v55 }
 0x40f   :  { %v2119_v29 = vpop.eup %2118 }
 0x410   :  { %v1137_v47 = vadd.f32 1.0, %v2119_v29  ;;  %v3620_v29 = vld [vmem:[%s3955_s4 + $0x68] sm:$0xff] }
 0x411   :  { %v2121_v5 = vpop.eup %2120  ;;  %4165 = vst [vmem:[#allocation25_spill] sm:$0xff] %v3620_v29 }
 0x412   :  { %2126 = vrcp.f32 %v1137_v47  ;;  %v1143_v6 = vadd.f32 1.0, %v2121_v5  ;;  %v2123_v7 = vpop.eup %2122  ;;  %v3626_v47 = vld [vmem:[%s3955_s4 + $0x78] sm:$0xff]  ;;  %v3632_v5 = vld [vmem:[%s3955_s4 + $0x60] sm:$0xff] }
 0x413   :  { %v2125_v8 = vpop.eup %2124  ;;  %4166 = vst [vmem:[#allocation27_spill] sm:$0xff] %v3626_v47  ;;  %4167 = vst [vmem:[#allocation28_spill] sm:$0xff] %v3632_v5 }
 0x414   :  { %2128 = vrcp.f32 %v1143_v6  ;;  %v1150_v13 = vadd.f32 1.0, %v2125_v8  ;;  %v3638_v6 = vld [vmem:[%s3955_s4 + $0x70] sm:$0xff]  ;;  %v3650_v8 = vld [vmem:[%s3955_s4 + $0x58] sm:$0xff] }
 0x415   :  { %4168 = vst [vmem:[#allocation26_spill] sm:$0xff] %v3638_v6  ;;  %4170 = vst [vmem:[#allocation9_spill] sm:$0xff] %v3650_v8 }
 0x416   :  { %2130 = vrcp.f32 %v1150_v13  ;;  %v3674_v13 = vld [vmem:[%s3955_s4 + $0x38] sm:$0xff] }
 0x417   :  { %4174 = vst [vmem:[#allocation13_spill] sm:$0xff] %v3674_v13 }
 0x41f   :  { %v2127_v9 = vpop.eup %2126 }
 0x420   :  { %v1154_v10 = vmul.f32 %v2127_v9, %v2123_v7  ;;  %v3644_v7 = vld [vmem:[%s3955_s4 + $0x48] sm:$0xff]  ;;  %v3656_v9 = vld [vmem:[%s3955_s4 + $0x40] sm:$0xff] }
 0x421   :  { %v2129_v12 = vpop.eup %2128  ;;  %4169 = vst [vmem:[#allocation8_spill] sm:$0xff] %v3644_v7  ;;  %4171 = vst [vmem:[#allocation10_spill] sm:$0xff] %v3656_v9 }
 0x422   :  { %v1153_v14 = vmul.f32 %v2129_v12, %v3264_v27  ;;  %v3524_v27 = vld [vmem:[%s3955_s4 + $0xe8] sm:$0xff] }
 0x423   :  { %v2131_v16 = vpop.eup %2130  ;;  %v3668_v12 = vld [vmem:[%s3955_s4 + $0x28] sm:$0xff] }
 0x424   :  { %v3478_v15 = vadd.f32 %v1154_v10, %v1153_v14  ;;  %v3662_v10 = vld [vmem:[%s3955_s4 + $0x50] sm:$0xff]  ;;  %4173 = vst [vmem:[#allocation12_spill] sm:$0xff] %v3668_v12  ;;  %v3680_v14 = vld [vmem:[%s3955_s4 + $0x20] sm:$0xff] }
 0x425   :  { %4172 = vst [vmem:[#allocation11_spill] sm:$0xff] %v3662_v10  ;;  %4175 = vst [vmem:[#allocation14_spill] sm:$0xff] %v3680_v14 }
 0x426   :  { %2132 = vtanh.f32 %v3478_v15 }
 0x433   :  { %v2133_v17 = vpop.eup %2132 }
 0x434   :  { %v1157_v18 = vmul.f32 %v2133_v17, %v2131_v16  ;;  %v3686_v16 = vld [vmem:[%s3955_s4 + $0x30] sm:$0xff]  ;;  %v3692_v17 = vld [vmem:[%s3955_s4 + $0x8] sm:$0xff] }
 0x435   :  { %4176 = vst [vmem:[#allocation15_spill] sm:$0xff] %v3686_v16  ;;  %4177 = vst [vmem:[#allocation16_spill] sm:$0xff] %v3692_v17 }
 0x436   :  { %1230 = vmatmul.mubr.f32.vlgmr.msra.gmra.mxu0 %v1157_v18  ;;  %1301 = vmatmul.mubr.f32.vlgmr.msra.gmra.mxu1 %v1157_v18  ;;  %v3698_v18 = vld [vmem:[%s3955_s4 + $0x18] sm:$0xff] }
 0x437   :  { %1343 = vmatpush1.msra.mxu0 %v3270_v32  ;;  %1414 = vmatpush1.msra.mxu1 %v3276_v20  ;;  %4178 = vst [vmem:[#allocation17_spill] sm:$0xff] %v3698_v18 }
 0x438   :  { %1344 = vmatprep.subr.mxu0 %v3282_v33  ;;  %1415 = vmatprep.subr.mxu1 %v3288_v34 }
 0x439   :  { %1345 = vmatpush1.msra.mxu0 %v3294_v35  ;;  %1416 = vmatpush1.msra.mxu1 %v3300_v38 }
 0x43a   :  { %1346 = vmatprep.subr.mxu0 %v3306_v3  ;;  %1417 = vmatprep.subr.mxu1 %v3312_v2 }
 0x43b   :  { %1347 = vmatpush1.msra.mxu0 %v3318_v57  ;;  %1418 = vmatpush1.msra.mxu1 %v3324_v62 }
 0x43c   :  { %1348 = vmatprep.subr.mxu0 %v3330_v58  ;;  %1419 = vmatprep.subr.mxu1 %v3336_v60 }
 0x43d   :  { %1349 = vmatpush1.msra.mxu0 %v3342_v1  ;;  %1420 = vmatpush1.msra.mxu1 %v3348_v59 }
 0x43e   :  { %1350 = vmatprep.subr.mxu0 %v3354_v52  ;;  %1421 = vmatprep.subr.mxu1 %v3360_v56 }
 0x43f   :  { %1351 = vmatpush1.msra.mxu0 %v3366_v11  ;;  %1422 = vmatpush1.msra.mxu1 %v3372_v0 }
 0x440   :  { %1352 = vmatprep.subr.mxu0 %v3378_v4  ;;  %1423 = vmatprep.subr.mxu1 %v3384_v54 }
 0x441   :  { %1353 = vmatpush1.msra.mxu0 %v3390_v63  ;;  %1424 = vmatpush1.msra.mxu1 %v3396_v61 }
 0x442   :  { %1354 = vmatprep.subr.mxu0 %v4162_v19  ;;  %1425 = vmatprep.subr.mxu1 %v4163_v21 }
 0x443   :  { %1355 = vmatpush1.msra.mxu0 %v3414_v30  ;;  %1426 = vmatpush1.msra.mxu1 %v3420_v31 }
 0x444   :  { %1356 = vmatprep.subr.mxu0 %v3426_v53  ;;  %1427 = vmatprep.subr.mxu1 %v3432_v28 }
 0x445   :  { %1357 = vmatpush1.msra.mxu0 %v3512_v22  ;;  %1428 = vmatpush1.msra.mxu1 %v3518_v24 }
 0x446   :  { %1358 = vmatprep.subr.mxu0 %v3524_v27  ;;  %1429 = vmatprep.subr.mxu1 %v3530_v36 }
 0x447   :  { %1359 = vmatpush1.msra.mxu0 %v3536_v37  ;;  %1430 = vmatpush1.msra.mxu1 %v3542_v39 }
 0x448   :  { %1360 = vmatprep.subr.mxu0 %v3548_v40  ;;  %1431 = vmatprep.subr.mxu1 %v3554_v41 }
 0x449   :  { %1361 = vmatpush1.msra.mxu0 %v3560_v42  ;;  %1432 = vmatpush1.msra.mxu1 %v3566_v43 }
 0x44a   :  { %1362 = vmatprep.subr.mxu0 %v3572_v44  ;;  %1433 = vmatprep.subr.mxu1 %v3578_v45 }
 0x44b   :  { %1363 = vmatpush1.msra.mxu0 %v3584_v46  ;;  %1434 = vmatpush1.msra.mxu1 %v3590_v48 }
 0x44c   :  { %1364 = vmatprep.subr.mxu0 %v3596_v49  ;;  %1435 = vmatprep.subr.mxu1 %v3602_v50 }
 0x44d   :  { %1365 = vmatpush1.msra.mxu0 %v3608_v51  ;;  %1436 = vmatpush1.msra.mxu1 %v3614_v55 }
 0x44e   :  { %1366 = vmatprep.subr.mxu0 %v3620_v29  ;;  %1437 = vmatprep.subr.mxu1 %v3626_v47  ;;  %v4184_v47 = vld [vmem:[#allocation38_spill] sm:$0xff] }
 0x44f   :  { %1367 = vmatpush1.msra.mxu0 %v3632_v5  ;;  %1438 = vmatpush1.msra.mxu1 %v3638_v6  ;;  %v4183_v5 = vld [vmem:[#allocation40_spill] sm:$0xff] }
 0x450   :  { %1368 = vmatprep.subr.mxu0 %v3644_v7  ;;  %1439 = vmatprep.subr.mxu1 %v3650_v8 }
 0x451   :  { %1369 = vmatpush1.msra.mxu0 %v3656_v9  ;;  %1440 = vmatpush1.msra.mxu1 %v3662_v10  ;;  %v4182_v10 = vld [vmem:[#allocation39_spill] sm:$0xff] }
 0x452   :  { %1370 = vmatprep.subr.mxu0 %v3668_v12  ;;  %1441 = vmatprep.subr.mxu1 %v3674_v13 }
 0x453   :  { %1371 = vmatpush1.msra.mxu0 %v3680_v14  ;;  %1442 = vmatpush1.msra.mxu1 %v3686_v16  ;;  %v3704_v14 = vld [vmem:[%s3955_s4] sm:$0xff]  ;;  %v4181_v16 = vld [vmem:[#allocation37_spill] sm:$0xff] }
 0x454   :  { %1372 = vmatprep.subr.mxu0 %v3692_v17  ;;  %1443 = vmatprep.subr.mxu1 %v3698_v18  ;;  %4179 = vst [vmem:[#allocation18_spill] sm:$0xff] %v3704_v14  ;;  %v3711_v17 = vld [vmem:[%s3955_s4 + $0x10] sm:$0xff] }
 0x455   :  { %1373 = vmatpush1.msra.mxu0 %v3704_v14  ;;  %1406 = vmatprep.mubr.f32.mxu0 %v4148_v23  ;;  %4180 = vst [vmem:[#allocation19_spill] sm:$0xff] %v3711_v17 }
 0x456   :  { %1444 = vmatpush1.msra.mxu1 %v3711_v17  ;;  %1477 = vmatprep.mubr.f32.mxu1 %v4148_v23 }
 0x457   :  { %1519 = vmatprep.subr.mxu0 %v3250_v25  ;;  %1590 = vmatprep.subr.mxu1 %v3256_v26 }
 0x4f6   :  { %v1231_v18 = vpop.f32.mrf.mxu0  ;;  %v1302_v8 = vpop.f32.mrf.mxu1 }
 0x4f7   :  { %v1307_v13 = vadd.f32 %v1231_v18, %v4181_v16  ;;  %v1309_v23 = vadd.f32 %v1302_v8, %v4184_v47  ;;  %v4190_v8 = vld [vmem:[#allocation8_spill] sm:$0xff] }
 0x4f8   :  { %v1233_v12 = vpop.f32.mrf.mxu0  ;;  %v1304_v6 = vpop.f32.mrf.mxu1 }
 0x4f9   :  { %v2003_v14 = vmul.f32 -1.442695, %v1307_v13  ;;  %v1308_v9 = vadd.f32 %v1233_v12, %v4182_v10  ;;  %v1310_v17 = vadd.f32 %v1304_v6, %v4183_v5  ;;  %v4189_v6 = vld [vmem:[#allocation26_spill] sm:$0xff] }
 0x4fb   :  { %2134 = vpow2.f32 %v2003_v14  ;;  %v2004_v7 = vmul.f32 -1.442695, %v1308_v9  ;;  %v2005_v29 = vmul.f32 -1.442695, %v1310_v17  ;;  %v4191_v17 = vld [vmem:[#allocation9_spill] sm:$0xff] }
 0x4fd   :  { %2136 = vpow2.f32 %v2004_v7 }
 0x4fe   :  { %2138 = vtanh.f32 %v1309_v23 }
 0x4ff   :  { %2140 = vpow2.f32 %v2005_v29  ;;  %v4188_v29 = vld [vmem:[#allocation28_spill] sm:$0xff] }
 0x508   :  { %v2135_v25 = vpop.eup %2134 }
 0x509   :  { %v1314_v55 = vadd.f32 1.0, %v2135_v25 }
 0x50a   :  { %v2137_v26 = vpop.eup %2136 }
 0x50b   :  { %2142 = vrcp.f32 %v1314_v55  ;;  %v1320_v16 = vadd.f32 1.0, %v2137_v26  ;;  %v2139_v13 = vpop.eup %2138  ;;  %v4185_v26 = vld [vmem:[#allocation4_spill] sm:$0xff]  ;;  %v4187_v55 = vld [vmem:[#allocation27_spill] sm:$0xff] }
 0x50c   :  { %v2141_v10 = vpop.eup %2140 }
 0x50d   :  { %2144 = vrcp.f32 %v1320_v16  ;;  %v1327_v7 = vadd.f32 1.0, %v2141_v10  ;;  %v4192_v16 = vld [vmem:[#allocation10_spill] sm:$0xff]  ;;  %v4194_v10 = vld [vmem:[#allocation12_spill] sm:$0xff] }
 0x50f   :  { %2146 = vrcp.f32 %v1327_v7  ;;  %v4198_v7 = vld [vmem:[#allocation16_spill] sm:$0xff] }
 0x518   :  { %v2143_v12 = vpop.eup %2142 }
 0x519   :  { %v1331_v14 = vmul.f32 %v2143_v12, %v2139_v13  ;;  %v4193_v13 = vld [vmem:[#allocation11_spill] sm:$0xff]  ;;  %v4195_v12 = vld [vmem:[#allocation13_spill] sm:$0xff] }
 0x51a   :  { %v2145_v9 = vpop.eup %2144 }
 0x51b   :  { %v1330_v18 = vmul.f32 %v2145_v9, %v3478_v15  ;;  %v4186_v15 = vld [vmem:[#allocation25_spill] sm:$0xff]  ;;  %v4197_v9 = vld [vmem:[#allocation15_spill] sm:$0xff] }
 0x51c   :  { %v2147_v25 = vpop.eup %2146 }
 0x51d   :  { %v3722_v5 = vadd.f32 %v1331_v14, %v1330_v18  ;;  %v4196_v14 = vld [vmem:[#allocation14_spill] sm:$0xff]  ;;  %v4199_v18 = vld [vmem:[#allocation17_spill] sm:$0xff] }
 0x51f   :  { %2148 = vtanh.f32 %v3722_v5 }
 0x52c   :  { %v2149_v23 = vpop.eup %2148 }
 0x52d   :  { %v1334_v47 = vmul.f32 %v2149_v23, %v2147_v25  ;;  %v4200_v25 = vld [vmem:[#allocation18_spill] sm:$0xff]  ;;  %v4201_v23 = vmov 0.0  }
 0x52f   :  { %1407 = vmatmul.mubr.f32.vlgmr.msra.gmra.mxu0 %v1334_v47  ;;  %1478 = vmatmul.mubr.f32.vlgmr.msra.gmra.mxu1 %v1334_v47  ;;  %v4202_v47 = vld [vmem:[#allocation19_spill] sm:$0xff] }
 0x530   :  { %1520 = vmatpush1.msra.mxu0 %v3270_v32  ;;  %1591 = vmatpush1.msra.mxu1 %v3276_v20 }
 0x531   :  { %1521 = vmatprep.subr.mxu0 %v3282_v33  ;;  %1592 = vmatprep.subr.mxu1 %v3288_v34 }
 0x532   :  { %1522 = vmatpush1.msra.mxu0 %v3294_v35  ;;  %1593 = vmatpush1.msra.mxu1 %v3300_v38 }
 0x533   :  { %1523 = vmatprep.subr.mxu0 %v3306_v3  ;;  %1594 = vmatprep.subr.mxu1 %v3312_v2 }
 0x534   :  { %1524 = vmatpush1.msra.mxu0 %v3318_v57  ;;  %1595 = vmatpush1.msra.mxu1 %v3324_v62 }
 0x535   :  { %1525 = vmatprep.subr.mxu0 %v3330_v58  ;;  %1596 = vmatprep.subr.mxu1 %v3336_v60 }
 0x536   :  { %1526 = vmatpush1.msra.mxu0 %v3342_v1  ;;  %1597 = vmatpush1.msra.mxu1 %v3348_v59 }
 0x537   :  { %1527 = vmatprep.subr.mxu0 %v3354_v52  ;;  %1598 = vmatprep.subr.mxu1 %v3360_v56 }
 0x538   :  { %1528 = vmatpush1.msra.mxu0 %v3366_v11  ;;  %1599 = vmatpush1.msra.mxu1 %v3372_v0 }
 0x539   :  { %1529 = vmatprep.subr.mxu0 %v3378_v4  ;;  %1600 = vmatprep.subr.mxu1 %v3384_v54 }
 0x53a   :  { %1530 = vmatpush1.msra.mxu0 %v3390_v63  ;;  %1601 = vmatpush1.msra.mxu1 %v3396_v61 }
 0x53b   :  { %1531 = vmatprep.subr.mxu0 %v4162_v19  ;;  %1602 = vmatprep.subr.mxu1 %v4163_v21 }
 0x53c   :  { %1532 = vmatpush1.msra.mxu0 %v3414_v30  ;;  %1603 = vmatpush1.msra.mxu1 %v3420_v31 }
 0x53d   :  { %1533 = vmatprep.subr.mxu0 %v3426_v53  ;;  %1604 = vmatprep.subr.mxu1 %v3432_v28 }
 0x53e   :  { %1534 = vmatpush1.msra.mxu0 %v3512_v22  ;;  %1605 = vmatpush1.msra.mxu1 %v3518_v24 }
 0x53f   :  { %1535 = vmatprep.subr.mxu0 %v3524_v27  ;;  %1606 = vmatprep.subr.mxu1 %v3530_v36 }
 0x540   :  { %1536 = vmatpush1.msra.mxu0 %v3536_v37  ;;  %1607 = vmatpush1.msra.mxu1 %v3542_v39 }
 0x541   :  { %1537 = vmatprep.subr.mxu0 %v3548_v40  ;;  %1608 = vmatprep.subr.mxu1 %v3554_v41 }
 0x542   :  { %1538 = vmatpush1.msra.mxu0 %v3560_v42  ;;  %1609 = vmatpush1.msra.mxu1 %v3566_v43 }
 0x543   :  { %1539 = vmatprep.subr.mxu0 %v3572_v44  ;;  %1610 = vmatprep.subr.mxu1 %v3578_v45 }
 0x544   :  { %1540 = vmatpush1.msra.mxu0 %v3584_v46  ;;  %1611 = vmatpush1.msra.mxu1 %v3590_v48 }
 0x545   :  { %1541 = vmatprep.subr.mxu0 %v3596_v49  ;;  %1612 = vmatprep.subr.mxu1 %v3602_v50 }
 0x546   :  { %1542 = vmatpush1.msra.mxu0 %v3608_v51  ;;  %1613 = vmatpush1.msra.mxu1 %v4185_v26 }
 0x547   :  { %1543 = vmatprep.subr.mxu0 %v4186_v15  ;;  %1614 = vmatprep.subr.mxu1 %v4187_v55  ;;  %v4208_v55 = vld [vmem:[#allocation42_spill] sm:$0xff] }
 0x548   :  { %1544 = vmatpush1.msra.mxu0 %v4188_v29  ;;  %1615 = vmatpush1.msra.mxu1 %v4189_v6  ;;  %v4207_v29 = vld [vmem:[#allocation44_spill] sm:$0xff] }
 0x549   :  { %1545 = vmatprep.subr.mxu0 %v4190_v8  ;;  %1616 = vmatprep.subr.mxu1 %v4191_v17 }
 0x54a   :  { %1546 = vmatpush1.msra.mxu0 %v4192_v16  ;;  %1617 = vmatpush1.msra.mxu1 %v4193_v13  ;;  %v4203_v13 = vld [vmem:[#allocation5_spill] sm:$0xff] }
 0x54b   :  { %1547 = vmatprep.subr.mxu0 %v4194_v10  ;;  %1618 = vmatprep.subr.mxu1 %v4195_v12  ;;  %v4204_v10 = vld [vmem:[#allocation6_spill] sm:$0xff] }
 0x54c   :  { %1548 = vmatpush1.msra.mxu0 %v4196_v14  ;;  %1619 = vmatpush1.msra.mxu1 %v4197_v9  ;;  %v4205_v14 = vld [vmem:[#allocation41_spill] sm:$0xff] }
 0x54d   :  { %1549 = vmatprep.subr.mxu0 %v4198_v7  ;;  %1620 = vmatprep.subr.mxu1 %v4199_v18  ;;  %v4206_v7 = vld [vmem:[#allocation43_spill] sm:$0xff] }
 0x54e   :  { %1550 = vmatpush1.msra.mxu0 %v4200_v25  ;;  %1583 = vmatprep.mubr.f32.mxu0 %v4201_v23 }
 0x54f   :  { %1621 = vmatpush1.msra.mxu1 %v4202_v47  ;;  %1654 = vmatprep.mubr.f32.mxu1 %v4201_v23 }
 0x550   :  { %1696 = vmatprep.subr.mxu0 %v4203_v13  ;;  %1767 = vmatprep.subr.mxu1 %v4204_v10 }
 0x5ef   :  { %v1408_v12 = vpop.f32.mrf.mxu0  ;;  %v1479_v18 = vpop.f32.mrf.mxu1 }
 0x5f0   :  { %v1484_v16 = vadd.f32 %v1408_v12, %v4205_v14  ;;  %v1486_v23 = vadd.f32 %v1479_v18, %v4208_v55 }
 0x5f1   :  { %v1410_v9 = vpop.f32.mrf.mxu0  ;;  %v1481_v6 = vpop.f32.mrf.mxu1 }
 0x5f2   :  { %v2006_v17 = vmul.f32 -1.442695, %v1484_v16  ;;  %v1485_v8 = vadd.f32 %v1410_v9, %v4206_v7  ;;  %v1487_v47 = vadd.f32 %v1481_v6, %v4207_v29 }
 0x5f4   :  { %2150 = vpow2.f32 %v2006_v17  ;;  %v2007_v25 = vmul.f32 -1.442695, %v1485_v8  ;;  %v2008_v15 = vmul.f32 -1.442695, %v1487_v47  ;;  %v1882_v47 = vld [vmem:[%s3959_s6 + $0x70] sm:$0xff] }
 0x5f6   :  { %2152 = vpow2.f32 %v2007_v25 }
 0x5f7   :  { %2154 = vtanh.f32 %v1486_v23  ;;  %v1883_v23 = vld [vmem:[%s3959_s6 + $0x78] sm:$0xff] }
 0x5f8   :  { %2156 = vpow2.f32 %v2008_v15 }
 0x601   :  { %v2151_v13 = vpop.eup %2150 }
 0x602   :  { %v1491_v26 = vadd.f32 1.0, %v2151_v13  ;;  %v1881_v13 = vld [vmem:[%s3959_s6 + $0x68] sm:$0xff] }
 0x603   :  { %v2153_v10 = vpop.eup %2152 }
 0x604   :  { %2158 = vrcp.f32 %v1491_v26  ;;  %v1497_v12 = vadd.f32 1.0, %v2153_v10  ;;  %v2155_v16 = vpop.eup %2154  ;;  %v1880_v10 = vld [vmem:[%s3959_s6 + $0x60] sm:$0xff] }
 0x605   :  { %v2157_v14 = vpop.eup %2156 }
 0x606   :  { %2160 = vrcp.f32 %v1497_v12  ;;  %v1504_v7 = vadd.f32 1.0, %v2157_v14  ;;  %v1879_v12 = vld [vmem:[%s3959_s6 + $0x58] sm:$0xff]  ;;  %v1877_v14 = vld [vmem:[%s3959_s6 + $0x48] sm:$0xff] }
 0x608   :  { %2162 = vrcp.f32 %v1504_v7  ;;  %v1873_v7 = vld [vmem:[%s3959_s6 + $0x28] sm:$0xff] }
 0x611   :  { %v2159_v17 = vpop.eup %2158 }
 0x612   :  { %v1508_v9 = vmul.f32 %v2159_v17, %v2155_v16  ;;  %v1878_v16 = vld [vmem:[%s3959_s6 + $0x50] sm:$0xff]  ;;  %v1876_v17 = vld [vmem:[%s3959_s6 + $0x40] sm:$0xff] }
 0x613   :  { %v2161_v8 = vpop.eup %2160 }
 0x614   :  { %v1507_v25 = vmul.f32 %v2161_v8, %v3722_v5  ;;  %v1874_v8 = vld [vmem:[%s3959_s6 + $0x30] sm:$0xff] }
 0x615   :  { %v2163_v55 = vpop.eup %2162 }
 0x616   :  { %v3796_v29 = vadd.f32 %v1508_v9, %v1507_v25  ;;  %v1875_v9 = vld [vmem:[%s3959_s6 + $0x38] sm:$0xff]  ;;  %v1872_v25 = vld [vmem:[%s3959_s6 + $0x20] sm:$0xff] }
 0x618   :  { %2164 = vtanh.f32 %v3796_v29 }
 0x625   :  { %v2165_v6 = vpop.eup %2164 }
 0x626   :  { %v1511_v18 = vmul.f32 %v2165_v6, %v2163_v55  ;;  %v1870_v55 = vld [vmem:[%s3959_s6 + $0x10] sm:$0xff]  ;;  %v1869_v6 = vld [vmem:[%s3959_s6 + $0x8] sm:$0xff] }
 0x628   :  { %1584 = vmatmul.mubr.f32.vlgmr.msra.gmra.mxu0 %v1511_v18  ;;  %1655 = vmatmul.mubr.f32.vlgmr.msra.gmra.mxu1 %v1511_v18  ;;  %v1868_v18 = vld [vmem:[%s3959_s6] sm:$0xff] }
 0x629   :  { %1697 = vmatpush1.msra.mxu0 %v3270_v32  ;;  %1768 = vmatpush1.msra.mxu1 %v3276_v20  ;;  %v4209_v32 = vld [vmem:[#allocation4_spill] sm:$0xff]  ;;  %v4210_v20 = vld [vmem:[#allocation25_spill] sm:$0xff] }
 0x62a   :  { %1698 = vmatprep.subr.mxu0 %v3282_v33  ;;  %1769 = vmatprep.subr.mxu1 %v3288_v34  ;;  %v4211_v33 = vld [vmem:[#allocation27_spill] sm:$0xff]  ;;  %v4212_v34 = vld [vmem:[#allocation28_spill] sm:$0xff] }
 0x62b   :  { %1699 = vmatpush1.msra.mxu0 %v3294_v35  ;;  %1770 = vmatpush1.msra.mxu1 %v3300_v38  ;;  %v4213_v35 = vld [vmem:[#allocation26_spill] sm:$0xff]  ;;  %v4214_v38 = vld [vmem:[#allocation8_spill] sm:$0xff] }
 0x62c   :  { %1700 = vmatprep.subr.mxu0 %v3306_v3  ;;  %1771 = vmatprep.subr.mxu1 %v3312_v2  ;;  %v4215_v3 = vld [vmem:[#allocation9_spill] sm:$0xff]  ;;  %v4216_v2 = vld [vmem:[#allocation10_spill] sm:$0xff] }
 0x62d   :  { %1701 = vmatpush1.msra.mxu0 %v3318_v57  ;;  %1772 = vmatpush1.msra.mxu1 %v3324_v62  ;;  %v4217_v57 = vld [vmem:[#allocation11_spill] sm:$0xff]  ;;  %v4218_v62 = vld [vmem:[#allocation12_spill] sm:$0xff] }
 0x62e   :  { %1702 = vmatprep.subr.mxu0 %v3330_v58  ;;  %1773 = vmatprep.subr.mxu1 %v3336_v60  ;;  %v4219_v58 = vld [vmem:[#allocation13_spill] sm:$0xff]  ;;  %v4220_v60 = vld [vmem:[#allocation14_spill] sm:$0xff] }
 0x62f   :  { %1703 = vmatpush1.msra.mxu0 %v3342_v1  ;;  %1774 = vmatpush1.msra.mxu1 %v3348_v59  ;;  %v4221_v1 = vld [vmem:[#allocation15_spill] sm:$0xff]  ;;  %v4222_v59 = vld [vmem:[#allocation16_spill] sm:$0xff] }
 0x630   :  { %1704 = vmatprep.subr.mxu0 %v3354_v52  ;;  %1775 = vmatprep.subr.mxu1 %v3360_v56  ;;  %v4223_v52 = vld [vmem:[#allocation17_spill] sm:$0xff]  ;;  %v4224_v56 = vld [vmem:[#allocation18_spill] sm:$0xff] }
 0x631   :  { %1705 = vmatpush1.msra.mxu0 %v3366_v11  ;;  %1776 = vmatpush1.msra.mxu1 %v3372_v0  ;;  %v4225_v11 = vmov 0.0   ;;  %v4226_v0 = vld [vmem:[#allocation19_spill] sm:$0xff] }
 0x632   :  { %1706 = vmatprep.subr.mxu0 %v3378_v4  ;;  %1777 = vmatprep.subr.mxu1 %v3384_v54  ;;  %v4227_v54 = vld [vmem:[#allocation45_spill] sm:$0xff] }
 0x633   :  { %1707 = vmatpush1.msra.mxu0 %v3390_v63  ;;  %1778 = vmatpush1.msra.mxu1 %v3396_v61 }
 0x634   :  { %1708 = vmatprep.subr.mxu0 %v4162_v19  ;;  %1779 = vmatprep.subr.mxu1 %v4163_v21 }
 0x635   :  { %1709 = vmatpush1.msra.mxu0 %v3414_v30  ;;  %1780 = vmatpush1.msra.mxu1 %v3420_v31 }
 0x636   :  { %1710 = vmatprep.subr.mxu0 %v3426_v53  ;;  %1781 = vmatprep.subr.mxu1 %v3432_v28  ;;  %v4228_v28 = vld [vmem:[#allocation47_spill] sm:$0xff] }
 0x637   :  { %1711 = vmatpush1.msra.mxu0 %v3512_v22  ;;  %1782 = vmatpush1.msra.mxu1 %v3518_v24  ;;  %v4229_v22 = vld [vmem:[#allocation48_spill] sm:$0xff] }
 0x638   :  { %1712 = vmatprep.subr.mxu0 %v3524_v27  ;;  %1783 = vmatprep.subr.mxu1 %v3530_v36  ;;  %v4230_v27 = vld [vmem:[#allocation46_spill] sm:$0xff] }
 0x639   :  { %1713 = vmatpush1.msra.mxu0 %v3536_v37  ;;  %1784 = vmatpush1.msra.mxu1 %v3542_v39 }
 0x63a   :  { %1714 = vmatprep.subr.mxu0 %v3548_v40  ;;  %1785 = vmatprep.subr.mxu1 %v3554_v41 }
 0x63b   :  { %1715 = vmatpush1.msra.mxu0 %v3560_v42  ;;  %1786 = vmatpush1.msra.mxu1 %v3566_v43 }
 0x63c   :  { %1716 = vmatprep.subr.mxu0 %v3572_v44  ;;  %1787 = vmatprep.subr.mxu1 %v3578_v45 }
 0x63d   :  { %1717 = vmatpush1.msra.mxu0 %v3584_v46  ;;  %1788 = vmatpush1.msra.mxu1 %v3590_v48 }
 0x63e   :  { %1718 = vmatprep.subr.mxu0 %v3596_v49  ;;  %1789 = vmatprep.subr.mxu1 %v3602_v50 }
 0x63f   :  { %1719 = vmatpush1.msra.mxu0 %v3608_v51  ;;  %1790 = vmatpush1.msra.mxu1 %v4209_v32 }
 0x640   :  { %1720 = vmatprep.subr.mxu0 %v4210_v20  ;;  %1791 = vmatprep.subr.mxu1 %v4211_v33  ;;  %v4231_v20 = vld [vmem:[#allocation49_spill] sm:$0xff] }
 0x641   :  { %1721 = vmatpush1.msra.mxu0 %v4212_v34  ;;  %1792 = vmatpush1.msra.mxu1 %v4213_v35 }
 0x642   :  { %1722 = vmatprep.subr.mxu0 %v4214_v38  ;;  %1793 = vmatprep.subr.mxu1 %v4215_v3  ;;  %v4232_v38 = vld [vmem:[#allocation51_spill] sm:$0xff] }
 0x643   :  { %1723 = vmatpush1.msra.mxu0 %v4216_v2  ;;  %1794 = vmatpush1.msra.mxu1 %v4217_v57 }
 0x644   :  { %1724 = vmatprep.subr.mxu0 %v4218_v62  ;;  %1795 = vmatprep.subr.mxu1 %v4219_v58  ;;  %v4233_v58 = vld [vmem:[#allocation52_spill] sm:$0xff] }
 0x645   :  { %1725 = vmatpush1.msra.mxu0 %v4220_v60  ;;  %1796 = vmatpush1.msra.mxu1 %v4221_v1  ;;  %v4234_v1 = vld [vmem:[#allocation50_spill] sm:$0xff] }
 0x646   :  { %1726 = vmatprep.subr.mxu0 %v4222_v59  ;;  %1797 = vmatprep.subr.mxu1 %v4223_v52 }
 0x647   :  { %1727 = vmatpush1.msra.mxu0 %v4224_v56  ;;  %1760 = vmatprep.mubr.f32.mxu0 %v4225_v11 }
 0x648   :  { %1798 = vmatpush1.msra.mxu1 %v4226_v0  ;;  %1831 = vmatprep.mubr.f32.mxu1 %v4225_v11 }
 0x649   :  { %2033 = vmatprep.subr.mxu0 %v4225_v11 }
 0x6e8   :  { %v1585_v4 = vpop.f32.mrf.mxu0  ;;  %v1656_v31 = vpop.f32.mrf.mxu1 }
 0x6e9   :  { %v1661_v63 = vadd.f32 %v1585_v4, %v4227_v54  ;;  %v1663_v36 = vadd.f32 %v1656_v31, %v4230_v27  ;;  %v2015_v27 = vld [vmem:[%s3962_s7] ss:$0 sm:$0xff] }
 0x6ea   :  { %v1587_v61 = vpop.f32.mrf.mxu0  ;;  %v1658_v21 = vpop.f32.mrf.mxu1 }
 0x6eb   :  { %v2009_v53 = vmul.f32 -1.442695, %v1661_v63  ;;  %v1662_v30 = vadd.f32 %v1587_v61, %v4228_v28  ;;  %v1664_v24 = vadd.f32 %v1658_v21, %v4229_v22 }
 0x6ed   :  { %2166 = vpow2.f32 %v2009_v53  ;;  %v2010_v19 = vmul.f32 -1.442695, %v1662_v30  ;;  %v2011_v37 = vmul.f32 -1.442695, %v1664_v24 }
 0x6ef   :  { %2168 = vpow2.f32 %v2010_v19 }
 0x6f0   :  { %2170 = vtanh.f32 %v1663_v36 }
 0x6f1   :  { %2172 = vpow2.f32 %v2011_v37 }
 0x6fa   :  { %v2167_v39 = vpop.eup %2166 }
 0x6fb   :  { %v1668_v40 = vadd.f32 1.0, %v2167_v39 }
 0x6fc   :  { %v2169_v41 = vpop.eup %2168 }
 0x6fd   :  { %2174 = vrcp.f32 %v1668_v40  ;;  %v1674_v42 = vadd.f32 1.0, %v2169_v41  ;;  %v2171_v43 = vpop.eup %2170 }
 0x6fe   :  { %v2173_v44 = vpop.eup %2172 }
 0x6ff   :  { %2176 = vrcp.f32 %v1674_v42  ;;  %v1681_v49 = vadd.f32 1.0, %v2173_v44 }
 0x701   :  { %2178 = vrcp.f32 %v1681_v49 }
 0x70a   :  { %v2175_v45 = vpop.eup %2174 }
 0x70b   :  { %v1685_v46 = vmul.f32 %v2175_v45, %v2171_v43 }
 0x70c   :  { %v2177_v48 = vpop.eup %2176 }
 0x70d   :  { %v1684_v50 = vmul.f32 %v2177_v48, %v3796_v29  ;;  %v1871_v29 = vld [vmem:[%s3959_s6 + $0x18] sm:$0xff] }
 0x70e   :  { %v2179_v5 = vpop.eup %2178 }
 0x70f   :  { %v3869_v51 = vadd.f32 %v1685_v46, %v1684_v50 }
 0x711   :  { %2180 = vtanh.f32 %v3869_v51 }
 0x71e   :  { %v2181_v26 = vpop.eup %2180 }
 0x71f   :  { %v1688_v15 = vmul.f32 %v2181_v26, %v2179_v5 }
 0x721   :  { %1761 = vmatmul.mubr.f32.vlgmr.msra.gmra.mxu0 %v1688_v15  ;;  %1832 = vmatmul.mubr.f32.vlgmr.msra.gmra.mxu1 %v1688_v15 }
 0x722   :  { %2034 = vmatpush3.msra.mxu0 %v1883_v23  ;;  %2065 = vmatprep.mubr.msk.f32.mxu0 %vm2267_vm0, %v4225_v11 }
 0x723   :  { %2035 = vmatprep.subr.mxu0 %v4225_v11 }
 0x724   :  { %2036 = vmatpush3.msra.mxu0 %v1882_v47 }
 0x725   :  { %2037 = vmatprep.subr.mxu0 %v4225_v11 }
 0x726   :  { %2038 = vmatpush3.msra.mxu0 %v1881_v13 }
 0x727   :  { %2039 = vmatprep.subr.mxu0 %v4225_v11 }
 0x728   :  { %2040 = vmatpush3.msra.mxu0 %v1880_v10 }
 0x729   :  { %2041 = vmatprep.subr.mxu0 %v4225_v11 }
 0x72a   :  { %2042 = vmatpush3.msra.mxu0 %v1879_v12 }
 0x72b   :  { %2043 = vmatprep.subr.mxu0 %v4225_v11 }
 0x72c   :  { %2044 = vmatpush3.msra.mxu0 %v1878_v16 }
 0x72d   :  { %2045 = vmatprep.subr.mxu0 %v4225_v11 }
 0x72e   :  { %2046 = vmatpush3.msra.mxu0 %v1877_v14 }
 0x72f   :  { %2047 = vmatprep.subr.mxu0 %v4225_v11 }
 0x730   :  { %2048 = vmatpush3.msra.mxu0 %v1876_v17 }
 0x731   :  { %2049 = vmatprep.subr.mxu0 %v4225_v11 }
 0x732   :  { %2050 = vmatpush3.msra.mxu0 %v1875_v9 }
 0x733   :  { %2051 = vmatprep.subr.mxu0 %v4225_v11 }
 0x734   :  { %2052 = vmatpush3.msra.mxu0 %v1874_v8 }
 0x735   :  { %2053 = vmatprep.subr.mxu0 %v4225_v11 }
 0x736   :  { %2054 = vmatpush3.msra.mxu0 %v1873_v7 }
 0x737   :  { %2055 = vmatprep.subr.mxu0 %v4225_v11 }
 0x738   :  { %2056 = vmatpush3.msra.mxu0 %v1872_v25 }
 0x739   :  { %2057 = vmatprep.subr.mxu0 %v4225_v11 }
 0x73a   :  { %2058 = vmatpush3.msra.mxu0 %v1871_v29 }
 0x73b   :  { %2059 = vmatprep.subr.mxu0 %v4225_v11 }
 0x73c   :  { %2060 = vmatpush3.msra.mxu0 %v1870_v55 }
 0x73d   :  { %2061 = vmatprep.subr.mxu0 %v4225_v11 }
 0x73e   :  { %2062 = vmatpush3.msra.mxu0 %v1869_v6 }
 0x73f   :  { %2063 = vmatprep.subr.mxu0 %v4225_v11 }
 0x740   :  { %2064 = vmatpush3.msra.mxu0 %v1868_v18 }
 0x7e1   :  { %v1762_v32 = vpop.f32.mrf.mxu0  ;;  %v1833_v2 = vpop.f32.mrf.mxu1 }
 0x7e2   :  { %v1838_v33 = vadd.f32 %v1762_v32, %v4231_v20  ;;  %v1840_v59 = vadd.f32 %v1833_v2, %v4234_v1 }
 0x7e3   :  { %v1764_v34 = vpop.f32.mrf.mxu0  ;;  %v1835_v62 = vpop.f32.mrf.mxu1 }
 0x7e4   :  { %v2012_v35 = vmul.f32 -1.442695, %v1838_v33  ;;  %v1839_v3 = vadd.f32 %v1764_v34, %v4232_v38  ;;  %v1841_v60 = vadd.f32 %v1835_v62, %v4233_v58 }
 0x7e6   :  { %2182 = vpow2.f32 %v2012_v35  ;;  %v2013_v57 = vmul.f32 -1.442695, %v1839_v3  ;;  %v2014_v52 = vmul.f32 -1.442695, %v1841_v60 }
 0x7e8   :  { %2184 = vpow2.f32 %v2013_v57 }
 0x7e9   :  { %2186 = vtanh.f32 %v1840_v59 }
 0x7ea   :  { %2188 = vpow2.f32 %v2014_v52 }
 0x7f3   :  { %v2183_v56 = vpop.eup %2182 }
 0x7f4   :  { %v1845_v11 = vadd.f32 1.0, %v2183_v56 }
 0x7f5   :  { %v2185_v0 = vpop.eup %2184 }
 0x7f6   :  { %2190 = vrcp.f32 %v1845_v11  ;;  %v1851_v4 = vadd.f32 1.0, %v2185_v0  ;;  %v2187_v54 = vpop.eup %2186 }
 0x7f7   :  { %v2189_v63 = vpop.eup %2188 }
 0x7f8   :  { %2192 = vrcp.f32 %v1851_v4  ;;  %v1858_v30 = vadd.f32 1.0, %v2189_v63 }
 0x7fa   :  { %2194 = vrcp.f32 %v1858_v30 }
 0x803   :  { %v2191_v61 = vpop.eup %2190 }
 0x804   :  { %v1862_v53 = vmul.f32 %v2191_v61, %v2187_v54 }
 0x805   :  { %v2193_v28 = vpop.eup %2192 }
 0x806   :  { %v1861_v31 = vmul.f32 %v2193_v28, %v3869_v51 }
 0x807   :  { %v2195_v21 = vpop.eup %2194 }
 0x808   :  { %v1863_v19 = vadd.f32 %v1862_v53, %v1861_v31 }
 0x80a   :  { %1867 = vst [vmem:[%s3960_s10] sm:$0xff] %v1863_v19  ;;  %2196 = vtanh.f32 %v1863_v19 }
 0x817   :  { %v2197_v22 = vpop.eup %2196 }
 0x818   :  { %v1865_v24 = vmul.f32 %v2197_v22, %v2195_v21 }
 0x81a   :  { %1866 = vst [vmem:[%s3961_s9] sm:$0xff] %v1865_v24  ;;  %2066 = vmatmul.mubr.f32.vlgmr.msra.gmra.mxu0 %v1865_v24 }
 0x8da   :  { %v1957_v36 = vpop.f32.mrf.mxu0 }
 0x8db   :  { %v1958_v37 = vadd.f32 %v2015_v27, %v1957_v36 }
 0x8dc   :  { %v2067_v39 = vpop.f32.mrf.mxu0 }
 0x8dd   :  { %1961 = vmax.xlane.f32.xlu0 %v1958_v37 }
 0x966   :  { %v1962_v40 = vpop.xlane.xlu0 %1961 }
 0x967   :  { %v1963_v41 = vsub.f32 %v1958_v37, %v1962_v40 }
 0x969   :  { %v1964_v42 = vmul.f32 1.442695, %v1963_v41 }
 0x96b   :  { %2198 = vpow2.f32 %v1964_v42 }
 0x978   :  { %v2199_v43 = vpop.eup %2198 }
 0x979   :  { %1966 = vadd.xlane.f32.xlu0 %v2199_v43 }
 0xa02   :  { %v1967_v44 = vpop.xlane.xlu0 %1966 }
 0xa03   :  { %2200 = vlog2.f32 %v1967_v44 }
 0xa10   :  { %v2201_v45 = vpop.eup %2200 }
 0xa11   :  { %v1969_v46 = vmul.f32 0.6931472, %v2201_v45 }
 0xa13   :  { %v1970_v48 = vsub.f32 %v1963_v41, %v1969_v46 }
 0xa15   :  { %1971 = vst [vmem:[%s3963_s8] sm:$0xff] %v1970_v48 }

</bundles_post_ra>
